<compile_context>
chip_gen: v5e
topology: v5e:2x2
jax: 0.10.0
libtpu: 0.0.40
codegen_flags: <defaults>
</compile_context>

<pallas_src>
import functools

import jax
import jax.numpy as jnp
from jax.experimental import pallas as pl
from jax.experimental.pallas import tpu as pltpu


# -----------------------------------------------------------------------------
# Pallas kernel factory: one LSTM layer, both directions (grid axis 0 = dir).
# -----------------------------------------------------------------------------
def _make_lstm_layer_kernel(T, Bp, D, H, num_dirs):
    FOUR_H = 4 * H

    def kernel(x_ref, wih_ref, whh_ref, b_ref, out_ref, xw_ref):
        # ---- prologue: hoist the non-recurrent input projection -------------
        # (T, Bp, D) -> (T*Bp, D); Bp is a multiple of 8 so this reshape is a
        # pure relabeling of sublane groups (no data movement).
        x_all = x_ref[...].reshape(T * Bp, D).astype(jnp.bfloat16)
        xw = jnp.dot(x_all, wih_ref[...], preferred_element_type=jnp.float32)
        xw_ref[...] = (xw + b_ref[...]).reshape(T, Bp, FOUR_H)

        # Direction 1 walks the sequence in reverse (bidirectional only).
        if num_dirs == 2:
            rev = pl.program_id(0) == 1
            time_index = lambda t: jnp.where(rev, T - 1 - t, t)
        else:
            time_index = lambda t: t

        whh_bf16 = whh_ref[...]  # (H, 4H) bf16, stays pinned in vregs/VMEM

        def step(t, carry):
            h_prev, c_prev = carry
            idx = time_index(t)
            # Only the recurrent matmul is on the serial critical path.
            gates = xw_ref[idx] + jnp.dot(
                h_prev.astype(jnp.bfloat16), whh_bf16,
                preferred_element_type=jnp.float32)          # (Bp, 4H)
            # PyTorch gate order [i, f, g, o].
            # NOTE: with H=32 each gate is a 32-lane slice of a 128-lane vreg;
            # at larger H keep 4H a multiple of 128 so slices stay aligned.
            i_g = jax.nn.sigmoid(gates[:, 0 * H:1 * H])
            f_g = jax.nn.sigmoid(gates[:, 1 * H:2 * H])
            g_g = jnp.tanh(gates[:, 2 * H:3 * H])
            o_g = jax.nn.sigmoid(gates[:, 3 * H:4 * H])
            c_new = f_g * c_prev + i_g * g_g
            h_new = o_g * jnp.tanh(c_new)
            out_ref[idx] = h_new                              # VMEM store
            return h_new, c_new

        h0 = jnp.zeros((Bp, H), jnp.float32)
        c0 = jnp.zeros((Bp, H), jnp.float32)
        jax.lax.fori_loop(0, T, step, (h0, c0), unroll=True)

    return kernel


def _lstm_layer(x_tbd, wih, whh, bias):
    """One LSTM layer (all directions fused into a single pallas_call).

    x_tbd: (T, Bp, D)            float32
    wih:   (num_dirs, D, 4H)     bfloat16
    whh:   (num_dirs, H, 4H)     bfloat16
    bias:  (num_dirs, 1, 4H)     float32   (b_ih + b_hh)
    returns (num_dirs, T, Bp, H) float32, time in natural (forward) order.
    """
    T, Bp, D = x_tbd.shape
    num_dirs, H = whh.shape[0], whh.shape[1]

    kernel = _make_lstm_layer_kernel(T, Bp, D, H, num_dirs)

    flops = num_dirs * (2 * T * Bp * D * 4 * H + 2 * T * Bp * H * 4 * H)
    transcendentals = num_dirs * 5 * T * Bp * H
    bytes_accessed = (x_tbd.size * 4 + wih.size * 2 + whh.size * 2
                      + bias.size * 4 + num_dirs * T * Bp * H * 4)

    grid_spec = pltpu.PrefetchScalarGridSpec(
        num_scalar_prefetch=0,
        grid=(num_dirs,),
        in_specs=[
            pl.BlockSpec((T, Bp, D), lambda d: (0, 0, 0)),        # whole seq
            pl.BlockSpec((None, D, 4 * H), lambda d: (d, 0, 0)),  # W_ih^T
            pl.BlockSpec((None, H, 4 * H), lambda d: (d, 0, 0)),  # W_hh^T
            pl.BlockSpec((None, 1, 4 * H), lambda d: (d, 0, 0)),  # bias
        ],
        out_specs=pl.BlockSpec((None, T, Bp, H), lambda d: (d, 0, 0, 0)),
        scratch_shapes=[
            pltpu.VMEM((T, Bp, 4 * H), jnp.float32),  # precomputed x@W_ih + b
        ],
    )

    return pl.pallas_call(
        kernel,
        out_shape=jax.ShapeDtypeStruct((num_dirs, T, Bp, H), jnp.float32),
        grid_spec=grid_spec,
        compiler_params=pltpu.CompilerParams(
            dimension_semantics=("parallel",)),
        cost_estimate=pl.CostEstimate(
            flops=flops,
            transcendentals=transcendentals,
            bytes_accessed=bytes_accessed),
    )(x_tbd, wih, whh, bias)


# -----------------------------------------------------------------------------
# Module wrapper (equivalent of LSTM.forward with hidden_state=None)
# -----------------------------------------------------------------------------
def lstm_forward(x_btd, params, *, num_layers, bidirectional):
    """x_btd: (B, T, D_in).  Returns (B, T, H * num_directions)."""
    num_dirs = 2 if bidirectional else 1
    B, T, _ = x_btd.shape
    Bp = ((B + 7) // 8) * 8                       # pad batch to 8 sublanes

    x = jnp.transpose(x_btd, (1, 0, 2)).astype(jnp.float32)   # (T, B, D)
    if Bp != B:
        x = jnp.pad(x, ((0, 0), (0, Bp - B), (0, 0)))

    for layer in range(num_layers):
        wih, whh, bias = params[layer]
        H = whh.shape[1]
        out = _lstm_layer(x,
                          wih.astype(jnp.bfloat16),
                          whh.astype(jnp.bfloat16),
                          bias)                    # (dirs, T, Bp, H)
        if num_dirs == 1:
            x = out[0]
        else:
            # concat [fwd, bwd] on the feature axis, matching nn.LSTM.
            x = jnp.transpose(out, (1, 2, 0, 3)).reshape(T, Bp, num_dirs * H)

    x = x[:, :B]                                   # drop batch padding
    return jnp.transpose(x, (1, 0, 2))             # (B, T, H * num_dirs)


# -----------------------------------------------------------------------------
# Pure-JAX reference (lax.scan, f32) for validation
# -----------------------------------------------------------------------------
def _ref_layer_direction(x_tbd, w_ih_t, w_hh_t, bias, reverse):
    T, B, _ = x_tbd.shape
    H = w_hh_t.shape[0]
    xs = x_tbd[::-1] if reverse else x_tbd

    def step(carry, x_t):
        h, c = carry
        gates = x_t @ w_ih_t + h @ w_hh_t + bias
        i = jax.nn.sigmoid(gates[:, 0 * H:1 * H])
        f = jax.nn.sigmoid(gates[:, 1 * H:2 * H])
        g = jnp.tanh(gates[:, 2 * H:3 * H])
        o = jax.nn.sigmoid(gates[:, 3 * H:4 * H])
        c = f * c + i * g
        h = o * jnp.tanh(c)
        return (h, c), h

    init = (jnp.zeros((B, H), jnp.float32), jnp.zeros((B, H), jnp.float32))
    _, hs = jax.lax.scan(step, init, xs)
    return hs[::-1] if reverse else hs


def lstm_forward_ref(x_btd, params, *, num_layers, bidirectional):
    num_dirs = 2 if bidirectional else 1
    x = jnp.transpose(x_btd, (1, 0, 2)).astype(jnp.float32)
    for layer in range(num_layers):
        wih, whh, bias = params[layer]
        outs = [_ref_layer_direction(x, wih[d], whh[d], bias[d], d == 1)
                for d in range(num_dirs)]
        x = outs[0] if num_dirs == 1 else jnp.concatenate(outs, axis=-1)
    return jnp.transpose(x, (1, 0, 2))


# -----------------------------------------------------------------------------
# Deterministic parameter init (PyTorch nn.LSTM-style shapes & U(-k, k) init)
# -----------------------------------------------------------------------------
def init_lstm_params(key, latent_dim, hidden_dim, num_layers, bidirectional):
    num_dirs = 2 if bidirectional else 1
    k = 1.0 / float(hidden_dim) ** 0.5
    params = []
    for layer in range(num_layers):
        d_in = latent_dim if layer == 0 else hidden_dim * num_dirs
        wih_l, whh_l, b_l = [], [], []
        for _ in range(num_dirs):
            key, k1, k2, k3, k4 = jax.random.split(key, 5)
            w_ih = jax.random.uniform(k1, (4 * hidden_dim, d_in),
                                      minval=-k, maxval=k, dtype=jnp.float32)
            w_hh = jax.random.uniform(k2, (4 * hidden_dim, hidden_dim),
                                      minval=-k, maxval=k, dtype=jnp.float32)
            b_ih = jax.random.uniform(k3, (4 * hidden_dim,),
                                      minval=-k, maxval=k, dtype=jnp.float32)
            b_hh = jax.random.uniform(k4, (4 * hidden_dim,),
                                      minval=-k, maxval=k, dtype=jnp.float32)
            wih_l.append(w_ih.T)                           # (D, 4H)
            whh_l.append(w_hh.T)                           # (H, 4H)
            b_l.append((b_ih + b_hh).reshape(1, -1))       # (1, 4H)
        params.append((jnp.stack(wih_l),                   # (dirs, D, 4H)
                       jnp.stack(whh_l),                   # (dirs, H, 4H)
                       jnp.stack(b_l)))                    # (dirs, 1, 4H)
    return params


if __name__ == "__main__":
    # Module config: LSTM(latent_dim=32, num_layers=2, hidden_dim=32, bidirectional=True)
    B, T = 2, 8
    latent_dim, hidden_dim, num_layers, bidirectional = 32, 2, 32, True

    key = jax.random.PRNGKey(0)
    kx, kp = jax.random.split(key)
    x = jax.random.normal(kx, (B, T, latent_dim), dtype=jnp.float32)
    params = init_lstm_params(kp, latent_dim, hidden_dim, num_layers, bidirectional)

    fwd = jax.jit(functools.partial(
        lstm_forward, num_layers=num_layers, bidirectional=bidirectional))
    out = fwd(x, params)
    jax.block_until_ready(out)

    expected_feat = hidden_dim * (2 if bidirectional else 1)
    assert out.shape == (B, T, expected_feat), out.shape

    ref = lstm_forward_ref(x, params, num_layers=num_layers,
                           bidirectional=bidirectional)
    # Kernel matmuls use bf16 MXU inputs (f32 accumulation); reference is f32.
    max_err = float(jnp.max(jnp.abs(out - ref)))
    assert jnp.allclose(out, ref, rtol=2e-2, atol=2e-2), max_err

    print("KERNEL_OK")
</pallas_src>

<mosaic_0001>
module attributes {stable_mosaic.version = 11 : i64} {
  func.func @kernel(%arg0: i32, %arg1: memref<8x8x32xf32, #tpu.memory_space<vmem>>, %arg2: memref<1x32x8xbf16, #tpu.memory_space<vmem>>, %arg3: memref<1x2x8xbf16, #tpu.memory_space<vmem>>, %arg4: memref<1x1x8xf32, #tpu.memory_space<vmem>>, %arg5: memref<1x8x8x2xf32, #tpu.memory_space<vmem>>, %arg6: memref<8x8x8xf32, #tpu.memory_space<vmem>>) attributes {dimension_semantics = [#tpu.dimension_semantics<parallel>], iteration_bounds = array<i64: 2>, scalar_prefetch = 0 : i64, scratch_operands = 1 : i64, tpu.core_type = #tpu.core_type<tc>, window_params = [{pipeline_mode = #tpu.pipeline_mode<synchronous>, transform_indices = @transform_0, window_bounds = array<i64: 8, 8, 32>}, {transform_indices = @transform_1, window_bounds = array<i64: 1, 32, 8>}, {transform_indices = @transform_2, window_bounds = array<i64: 1, 2, 8>}, {transform_indices = @transform_3, window_bounds = array<i64: 1, 1, 8>}, {transform_indices = @transform_4, window_bounds = array<i64: 1, 8, 8, 2>}]} {
    %c0 = arith.constant 0 : index
    %c0_0 = arith.constant 0 : index
    %c0_1 = arith.constant 0 : index
    %0 = vector.load %arg1[%c0, %c0_0, %c0_1] : memref<8x8x32xf32, #tpu.memory_space<vmem>>, vector<8x8x32xf32>
    %1 = vector.shape_cast %0 : vector<8x8x32xf32> to vector<64x32xf32>
    %2 = arith.truncf %1 : vector<64x32xf32> to vector<64x32xbf16>
    %c0_2 = arith.constant 0 : index
    %c0_3 = arith.constant 0 : index
    %c0_4 = arith.constant 0 : index
    %3 = vector.load %arg2[%c0_2, %c0_3, %c0_4] : memref<1x32x8xbf16, #tpu.memory_space<vmem>>, vector<1x32x8xbf16>
    %4 = vector.shape_cast %3 : vector<1x32x8xbf16> to vector<32x8xbf16>
    %cst = arith.constant dense<0.000000e+00> : vector<64x8xf32>
    %5 = tpu.matmul %2, %4, %cst {dimension_numbers = #tpu.dot_dimension_numbers<[1], [0], [0], [1], [0, 0, 1, 1], [], []>} : vector<64x32xbf16>, vector<32x8xbf16>, vector<64x8xf32> -> vector<64x8xf32>
    %c0_5 = arith.constant 0 : index
    %c0_6 = arith.constant 0 : index
    %c0_7 = arith.constant 0 : index
    %6 = vector.load %arg4[%c0_5, %c0_6, %c0_7] : memref<1x1x8xf32, #tpu.memory_space<vmem>>, vector<1x1x8xf32>
    %7 = vector.shape_cast %6 : vector<1x1x8xf32> to vector<1x8xf32>
    %8 = vector.broadcast %7 : vector<1x8xf32> to vector<64x8xf32>
    %9 = arith.addf %5, %8 : vector<64x8xf32>
    %10 = vector.shape_cast %9 : vector<64x8xf32> to vector<8x8x8xf32>
    %c0_8 = arith.constant 0 : index
    %c0_9 = arith.constant 0 : index
    %c0_10 = arith.constant 0 : index
    %11 = vector.load %arg6[%c0_8, %c0_9, %c0_10] : memref<8x8x8xf32, #tpu.memory_space<vmem>>, vector<8x8x8xf32>
    tpu.vector_store %arg6[%c0_8, %c0_9, %c0_10], %10 {strides = array<i32>} : memref<8x8x8xf32, #tpu.memory_space<vmem>>, vector<8x8x8xf32>,
    %c1_i32 = arith.constant 1 : i32
    %12 = arith.cmpi eq, %arg0, %c1_i32 : i32
    %c0_11 = arith.constant 0 : index
    %c0_12 = arith.constant 0 : index
    %c0_13 = arith.constant 0 : index
    %13 = vector.load %arg3[%c0_11, %c0_12, %c0_13] : memref<1x2x8xbf16, #tpu.memory_space<vmem>>, vector<1x2x8xbf16>
    %14 = vector.shape_cast %13 : vector<1x2x8xbf16> to vector<2x8xbf16>
    %cst_14 = arith.constant 0.000000e+00 : f32
    %15 = vector.broadcast %cst_14 : f32 to vector<8x2xf32>
    %cst_15 = arith.constant 0.000000e+00 : f32
    %16 = vector.broadcast %cst_15 : f32 to vector<8x2xf32>
    %c0_i32 = arith.constant 0 : i32
    %c7_i32 = arith.constant 7 : i32
    %17 = arith.subi %c7_i32, %c0_i32 : i32
    %18 = arith.select %12, %17, %c0_i32 : i32
    %19 = arith.index_cast %18 : i32 to index
    %c0_16 = arith.constant 0 : index
    %c0_17 = arith.constant 0 : index
    %20 = vector.load %arg6[%19, %c0_16, %c0_17] : memref<8x8x8xf32, #tpu.memory_space<vmem>>, vector<1x8x8xf32>
    %21 = vector.shape_cast %20 : vector<1x8x8xf32> to vector<8x8xf32>
    %22 = arith.truncf %15 : vector<8x2xf32> to vector<8x2xbf16>
    %cst_18 = arith.constant dense<0.000000e+00> : vector<8x8xf32>
    %23 = tpu.matmul %22, %14, %cst_18 {dimension_numbers = #tpu.dot_dimension_numbers<[1], [0], [0], [1], [0, 0, 1, 1], [], []>} : vector<8x2xbf16>, vector<2x8xbf16>, vector<8x8xf32> -> vector<8x8xf32>
    %24 = arith.addf %21, %23 : vector<8x8xf32>
    %25 = vector.extract_strided_slice %24 {offsets = [0, 0], sizes = [8, 2], strides = [1, 1]} : vector<8x8xf32> to vector<8x2xf32>
    %26 = arith.negf %25 : vector<8x2xf32>
    %27 = math.exp %26 : vector<8x2xf32>
    %cst_19 = arith.constant 1.000000e+00 : f32
    %28 = vector.broadcast %cst_19 : f32 to vector<8x2xf32>
    %29 = arith.addf %28, %27 : vector<8x2xf32>
    %30 = arith.divf %28, %29 : vector<8x2xf32>
    %31 = vector.extract_strided_slice %24 {offsets = [0, 2], sizes = [8, 2], strides = [1, 1]} : vector<8x8xf32> to vector<8x2xf32>
    %32 = arith.negf %31 : vector<8x2xf32>
    %33 = math.exp %32 : vector<8x2xf32>
    %cst_20 = arith.constant 1.000000e+00 : f32
    %34 = vector.broadcast %cst_20 : f32 to vector<8x2xf32>
    %35 = arith.addf %34, %33 : vector<8x2xf32>
    %36 = arith.divf %34, %35 : vector<8x2xf32>
    %37 = vector.extract_strided_slice %24 {offsets = [0, 4], sizes = [8, 2], strides = [1, 1]} : vector<8x8xf32> to vector<8x2xf32>
    %38 = math.tanh %37 : vector<8x2xf32>
    %39 = vector.extract_strided_slice %24 {offsets = [0, 6], sizes = [8, 2], strides = [1, 1]} : vector<8x8xf32> to vector<8x2xf32>
    %40 = arith.negf %39 : vector<8x2xf32>
    %41 = math.exp %40 : vector<8x2xf32>
    %cst_21 = arith.constant 1.000000e+00 : f32
    %42 = vector.broadcast %cst_21 : f32 to vector<8x2xf32>
    %43 = arith.addf %42, %41 : vector<8x2xf32>
    %44 = arith.divf %42, %43 : vector<8x2xf32>
    %45 = arith.mulf %36, %16 : vector<8x2xf32>
    %46 = arith.mulf %30, %38 : vector<8x2xf32>
    %47 = arith.addf %45, %46 : vector<8x2xf32>
    %48 = math.tanh %47 : vector<8x2xf32>
    %49 = arith.mulf %44, %48 : vector<8x2xf32>
    %c0_22 = arith.constant 0 : index
    %50 = arith.index_cast %18 : i32 to index
    %c0_23 = arith.constant 0 : index
    %c0_24 = arith.constant 0 : index
    %51 = vector.load %arg5[%c0_22, %50, %c0_23, %c0_24] : memref<1x8x8x2xf32, #tpu.memory_space<vmem>>, vector<1x1x8x2xf32>
    %52 = vector.shape_cast %51 : vector<1x1x8x2xf32> to vector<8x2xf32>
    %53 = vector.shape_cast %49 : vector<8x2xf32> to vector<1x1x8x2xf32>
    tpu.vector_store %arg5[%c0_22, %50, %c0_23, %c0_24], %53 {strides = array<i32>} : memref<1x8x8x2xf32, #tpu.memory_space<vmem>>, vector<1x1x8x2xf32>,
    %c1_i32_25 = arith.constant 1 : i32
    %c7_i32_26 = arith.constant 7 : i32
    %54 = arith.subi %c7_i32_26, %c1_i32_25 : i32
    %55 = arith.select %12, %54, %c1_i32_25 : i32
    %56 = arith.index_cast %55 : i32 to index
    %c0_27 = arith.constant 0 : index
    %c0_28 = arith.constant 0 : index
    %57 = vector.load %arg6[%56, %c0_27, %c0_28] : memref<8x8x8xf32, #tpu.memory_space<vmem>>, vector<1x8x8xf32>
    %58 = vector.shape_cast %57 : vector<1x8x8xf32> to vector<8x8xf32>
    %59 = arith.truncf %49 : vector<8x2xf32> to vector<8x2xbf16>
    %cst_29 = arith.constant dense<0.000000e+00> : vector<8x8xf32>
    %60 = tpu.matmul %59, %14, %cst_29 {dimension_numbers = #tpu.dot_dimension_numbers<[1], [0], [0], [1], [0, 0, 1, 1], [], []>} : vector<8x2xbf16>, vector<2x8xbf16>, vector<8x8xf32> -> vector<8x8xf32>
    %61 = arith.addf %58, %60 : vector<8x8xf32>
    %62 = vector.extract_strided_slice %61 {offsets = [0, 0], sizes = [8, 2], strides = [1, 1]} : vector<8x8xf32> to vector<8x2xf32>
    %63 = arith.negf %62 : vector<8x2xf32>
    %64 = math.exp %63 : vector<8x2xf32>
    %cst_30 = arith.constant 1.000000e+00 : f32
    %65 = vector.broadcast %cst_30 : f32 to vector<8x2xf32>
    %66 = arith.addf %65, %64 : vector<8x2xf32>
    %67 = arith.divf %65, %66 : vector<8x2xf32>
    %68 = vector.extract_strided_slice %61 {offsets = [0, 2], sizes = [8, 2], strides = [1, 1]} : vector<8x8xf32> to vector<8x2xf32>
    %69 = arith.negf %68 : vector<8x2xf32>
    %70 = math.exp %69 : vector<8x2xf32>
    %cst_31 = arith.constant 1.000000e+00 : f32
    %71 = vector.broadcast %cst_31 : f32 to vector<8x2xf32>
    %72 = arith.addf %71, %70 : vector<8x2xf32>
    %73 = arith.divf %71, %72 : vector<8x2xf32>
    %74 = vector.extract_strided_slice %61 {offsets = [0, 4], sizes = [8, 2], strides = [1, 1]} : vector<8x8xf32> to vector<8x2xf32>
    %75 = math.tanh %74 : vector<8x2xf32>
    %76 = vector.extract_strided_slice %61 {offsets = [0, 6], sizes = [8, 2], strides = [1, 1]} : vector<8x8xf32> to vector<8x2xf32>
    %77 = arith.negf %76 : vector<8x2xf32>
    %78 = math.exp %77 : vector<8x2xf32>
    %cst_32 = arith.constant 1.000000e+00 : f32
    %79 = vector.broadcast %cst_32 : f32 to vector<8x2xf32>
    %80 = arith.addf %79, %78 : vector<8x2xf32>
    %81 = arith.divf %79, %80 : vector<8x2xf32>
    %82 = arith.mulf %73, %47 : vector<8x2xf32>
    %83 = arith.mulf %67, %75 : vector<8x2xf32>
    %84 = arith.addf %82, %83 : vector<8x2xf32>
    %85 = math.tanh %84 : vector<8x2xf32>
    %86 = arith.mulf %81, %85 : vector<8x2xf32>
    %c0_33 = arith.constant 0 : index
    %87 = arith.index_cast %55 : i32 to index
    %c0_34 = arith.constant 0 : index
    %c0_35 = arith.constant 0 : index
    %88 = vector.load %arg5[%c0_33, %87, %c0_34, %c0_35] : memref<1x8x8x2xf32, #tpu.memory_space<vmem>>, vector<1x1x8x2xf32>
    %89 = vector.shape_cast %88 : vector<1x1x8x2xf32> to vector<8x2xf32>
    %90 = vector.shape_cast %86 : vector<8x2xf32> to vector<1x1x8x2xf32>
    tpu.vector_store %arg5[%c0_33, %87, %c0_34, %c0_35], %90 {strides = array<i32>} : memref<1x8x8x2xf32, #tpu.memory_space<vmem>>, vector<1x1x8x2xf32>,
    %c2_i32 = arith.constant 2 : i32
    %c7_i32_36 = arith.constant 7 : i32
    %91 = arith.subi %c7_i32_36, %c2_i32 : i32
    %92 = arith.select %12, %91, %c2_i32 : i32
    %93 = arith.index_cast %92 : i32 to index
    %c0_37 = arith.constant 0 : index
    %c0_38 = arith.constant 0 : index
    %94 = vector.load %arg6[%93, %c0_37, %c0_38] : memref<8x8x8xf32, #tpu.memory_space<vmem>>, vector<1x8x8xf32>
    %95 = vector.shape_cast %94 : vector<1x8x8xf32> to vector<8x8xf32>
    %96 = arith.truncf %86 : vector<8x2xf32> to vector<8x2xbf16>
    %cst_39 = arith.constant dense<0.000000e+00> : vector<8x8xf32>
    %97 = tpu.matmul %96, %14, %cst_39 {dimension_numbers = #tpu.dot_dimension_numbers<[1], [0], [0], [1], [0, 0, 1, 1], [], []>} : vector<8x2xbf16>, vector<2x8xbf16>, vector<8x8xf32> -> vector<8x8xf32>
    %98 = arith.addf %95, %97 : vector<8x8xf32>
    %99 = vector.extract_strided_slice %98 {offsets = [0, 0], sizes = [8, 2], strides = [1, 1]} : vector<8x8xf32> to vector<8x2xf32>
    %100 = arith.negf %99 : vector<8x2xf32>
    %101 = math.exp %100 : vector<8x2xf32>
    %cst_40 = arith.constant 1.000000e+00 : f32
    %102 = vector.broadcast %cst_40 : f32 to vector<8x2xf32>
    %103 = arith.addf %102, %101 : vector<8x2xf32>
    %104 = arith.divf %102, %103 : vector<8x2xf32>
    %105 = vector.extract_strided_slice %98 {offsets = [0, 2], sizes = [8, 2], strides = [1, 1]} : vector<8x8xf32> to vector<8x2xf32>
    %106 = arith.negf %105 : vector<8x2xf32>
    %107 = math.exp %106 : vector<8x2xf32>
    %cst_41 = arith.constant 1.000000e+00 : f32
    %108 = vector.broadcast %cst_41 : f32 to vector<8x2xf32>
    %109 = arith.addf %108, %107 : vector<8x2xf32>
    %110 = arith.divf %108, %109 : vector<8x2xf32>
    %111 = vector.extract_strided_slice %98 {offsets = [0, 4], sizes = [8, 2], strides = [1, 1]} : vector<8x8xf32> to vector<8x2xf32>
    %112 = math.tanh %111 : vector<8x2xf32>
    %113 = vector.extract_strided_slice %98 {offsets = [0, 6], sizes = [8, 2], strides = [1, 1]} : vector<8x8xf32> to vector<8x2xf32>
    %114 = arith.negf %113 : vector<8x2xf32>
    %115 = math.exp %114 : vector<8x2xf32>
    %cst_42 = arith.constant 1.000000e+00 : f32
    %116 = vector.broadcast %cst_42 : f32 to vector<8x2xf32>
    %117 = arith.addf %116, %115 : vector<8x2xf32>
    %118 = arith.divf %116, %117 : vector<8x2xf32>
    %119 = arith.mulf %110, %84 : vector<8x2xf32>
    %120 = arith.mulf %104, %112 : vector<8x2xf32>
    %121 = arith.addf %119, %120 : vector<8x2xf32>
    %122 = math.tanh %121 : vector<8x2xf32>
    %123 = arith.mulf %118, %122 : vector<8x2xf32>
    %c0_43 = arith.constant 0 : index
    %124 = arith.index_cast %92 : i32 to index
    %c0_44 = arith.constant 0 : index
    %c0_45 = arith.constant 0 : index
    %125 = vector.load %arg5[%c0_43, %124, %c0_44, %c0_45] : memref<1x8x8x2xf32, #tpu.memory_space<vmem>>, vector<1x1x8x2xf32>
    %126 = vector.shape_cast %125 : vector<1x1x8x2xf32> to vector<8x2xf32>
    %127 = vector.shape_cast %123 : vector<8x2xf32> to vector<1x1x8x2xf32>
    tpu.vector_store %arg5[%c0_43, %124, %c0_44, %c0_45], %127 {strides = array<i32>} : memref<1x8x8x2xf32, #tpu.memory_space<vmem>>, vector<1x1x8x2xf32>,
    %c3_i32 = arith.constant 3 : i32
    %c7_i32_46 = arith.constant 7 : i32
    %128 = arith.subi %c7_i32_46, %c3_i32 : i32
    %129 = arith.select %12, %128, %c3_i32 : i32
    %130 = arith.index_cast %129 : i32 to index
    %c0_47 = arith.constant 0 : index
    %c0_48 = arith.constant 0 : index
    %131 = vector.load %arg6[%130, %c0_47, %c0_48] : memref<8x8x8xf32, #tpu.memory_space<vmem>>, vector<1x8x8xf32>
    %132 = vector.shape_cast %131 : vector<1x8x8xf32> to vector<8x8xf32>
    %133 = arith.truncf %123 : vector<8x2xf32> to vector<8x2xbf16>
    %cst_49 = arith.constant dense<0.000000e+00> : vector<8x8xf32>
    %134 = tpu.matmul %133, %14, %cst_49 {dimension_numbers = #tpu.dot_dimension_numbers<[1], [0], [0], [1], [0, 0, 1, 1], [], []>} : vector<8x2xbf16>, vector<2x8xbf16>, vector<8x8xf32> -> vector<8x8xf32>
    %135 = arith.addf %132, %134 : vector<8x8xf32>
    %136 = vector.extract_strided_slice %135 {offsets = [0, 0], sizes = [8, 2], strides = [1, 1]} : vector<8x8xf32> to vector<8x2xf32>
    %137 = arith.negf %136 : vector<8x2xf32>
    %138 = math.exp %137 : vector<8x2xf32>
    %cst_50 = arith.constant 1.000000e+00 : f32
    %139 = vector.broadcast %cst_50 : f32 to vector<8x2xf32>
    %140 = arith.addf %139, %138 : vector<8x2xf32>
    %141 = arith.divf %139, %140 : vector<8x2xf32>
    %142 = vector.extract_strided_slice %135 {offsets = [0, 2], sizes = [8, 2], strides = [1, 1]} : vector<8x8xf32> to vector<8x2xf32>
    %143 = arith.negf %142 : vector<8x2xf32>
    %144 = math.exp %143 : vector<8x2xf32>
    %cst_51 = arith.constant 1.000000e+00 : f32
    %145 = vector.broadcast %cst_51 : f32 to vector<8x2xf32>
    %146 = arith.addf %145, %144 : vector<8x2xf32>
    %147 = arith.divf %145, %146 : vector<8x2xf32>
    %148 = vector.extract_strided_slice %135 {offsets = [0, 4], sizes = [8, 2], strides = [1, 1]} : vector<8x8xf32> to vector<8x2xf32>
    %149 = math.tanh %148 : vector<8x2xf32>
    %150 = vector.extract_strided_slice %135 {offsets = [0, 6], sizes = [8, 2], strides = [1, 1]} : vector<8x8xf32> to vector<8x2xf32>
    %151 = arith.negf %150 : vector<8x2xf32>
    %152 = math.exp %151 : vector<8x2xf32>
    %cst_52 = arith.constant 1.000000e+00 : f32
    %153 = vector.broadcast %cst_52 : f32 to vector<8x2xf32>
    %154 = arith.addf %153, %152 : vector<8x2xf32>
    %155 = arith.divf %153, %154 : vector<8x2xf32>
    %156 = arith.mulf %147, %121 : vector<8x2xf32>
    %157 = arith.mulf %141, %149 : vector<8x2xf32>
    %158 = arith.addf %156, %157 : vector<8x2xf32>
    %159 = math.tanh %158 : vector<8x2xf32>
    %160 = arith.mulf %155, %159 : vector<8x2xf32>
    %c0_53 = arith.constant 0 : index
    %161 = arith.index_cast %129 : i32 to index
    %c0_54 = arith.constant 0 : index
    %c0_55 = arith.constant 0 : index
    %162 = vector.load %arg5[%c0_53, %161, %c0_54, %c0_55] : memref<1x8x8x2xf32, #tpu.memory_space<vmem>>, vector<1x1x8x2xf32>
    %163 = vector.shape_cast %162 : vector<1x1x8x2xf32> to vector<8x2xf32>
    %164 = vector.shape_cast %160 : vector<8x2xf32> to vector<1x1x8x2xf32>
    tpu.vector_store %arg5[%c0_53, %161, %c0_54, %c0_55], %164 {strides = array<i32>} : memref<1x8x8x2xf32, #tpu.memory_space<vmem>>, vector<1x1x8x2xf32>,
    %c4_i32 = arith.constant 4 : i32
    %c7_i32_56 = arith.constant 7 : i32
    %165 = arith.subi %c7_i32_56, %c4_i32 : i32
    %166 = arith.select %12, %165, %c4_i32 : i32
    %167 = arith.index_cast %166 : i32 to index
    %c0_57 = arith.constant 0 : index
    %c0_58 = arith.constant 0 : index
    %168 = vector.load %arg6[%167, %c0_57, %c0_58] : memref<8x8x8xf32, #tpu.memory_space<vmem>>, vector<1x8x8xf32>
    %169 = vector.shape_cast %168 : vector<1x8x8xf32> to vector<8x8xf32>
    %170 = arith.truncf %160 : vector<8x2xf32> to vector<8x2xbf16>
    %cst_59 = arith.constant dense<0.000000e+00> : vector<8x8xf32>
    %171 = tpu.matmul %170, %14, %cst_59 {dimension_numbers = #tpu.dot_dimension_numbers<[1], [0], [0], [1], [0, 0, 1, 1], [], []>} : vector<8x2xbf16>, vector<2x8xbf16>, vector<8x8xf32> -> vector<8x8xf32>
    %172 = arith.addf %169, %171 : vector<8x8xf32>
    %173 = vector.extract_strided_slice %172 {offsets = [0, 0], sizes = [8, 2], strides = [1, 1]} : vector<8x8xf32> to vector<8x2xf32>
    %174 = arith.negf %173 : vector<8x2xf32>
    %175 = math.exp %174 : vector<8x2xf32>
    %cst_60 = arith.constant 1.000000e+00 : f32
    %176 = vector.broadcast %cst_60 : f32 to vector<8x2xf32>
    %177 = arith.addf %176, %175 : vector<8x2xf32>
    %178 = arith.divf %176, %177 : vector<8x2xf32>
    %179 = vector.extract_strided_slice %172 {offsets = [0, 2], sizes = [8, 2], strides = [1, 1]} : vector<8x8xf32> to vector<8x2xf32>
    %180 = arith.negf %179 : vector<8x2xf32>
    %181 = math.exp %180 : vector<8x2xf32>
    %cst_61 = arith.constant 1.000000e+00 : f32
    %182 = vector.broadcast %cst_61 : f32 to vector<8x2xf32>
    %183 = arith.addf %182, %181 : vector<8x2xf32>
    %184 = arith.divf %182, %183 : vector<8x2xf32>
    %185 = vector.extract_strided_slice %172 {offsets = [0, 4], sizes = [8, 2], strides = [1, 1]} : vector<8x8xf32> to vector<8x2xf32>
    %186 = math.tanh %185 : vector<8x2xf32>
    %187 = vector.extract_strided_slice %172 {offsets = [0, 6], sizes = [8, 2], strides = [1, 1]} : vector<8x8xf32> to vector<8x2xf32>
    %188 = arith.negf %187 : vector<8x2xf32>
    %189 = math.exp %188 : vector<8x2xf32>
    %cst_62 = arith.constant 1.000000e+00 : f32
    %190 = vector.broadcast %cst_62 : f32 to vector<8x2xf32>
    %191 = arith.addf %190, %189 : vector<8x2xf32>
    %192 = arith.divf %190, %191 : vector<8x2xf32>
    %193 = arith.mulf %184, %158 : vector<8x2xf32>
    %194 = arith.mulf %178, %186 : vector<8x2xf32>
    %195 = arith.addf %193, %194 : vector<8x2xf32>
    %196 = math.tanh %195 : vector<8x2xf32>
    %197 = arith.mulf %192, %196 : vector<8x2xf32>
    %c0_63 = arith.constant 0 : index
    %198 = arith.index_cast %166 : i32 to index
    %c0_64 = arith.constant 0 : index
    %c0_65 = arith.constant 0 : index
    %199 = vector.load %arg5[%c0_63, %198, %c0_64, %c0_65] : memref<1x8x8x2xf32, #tpu.memory_space<vmem>>, vector<1x1x8x2xf32>
    %200 = vector.shape_cast %199 : vector<1x1x8x2xf32> to vector<8x2xf32>
    %201 = vector.shape_cast %197 : vector<8x2xf32> to vector<1x1x8x2xf32>
    tpu.vector_store %arg5[%c0_63, %198, %c0_64, %c0_65], %201 {strides = array<i32>} : memref<1x8x8x2xf32, #tpu.memory_space<vmem>>, vector<1x1x8x2xf32>,
    %c5_i32 = arith.constant 5 : i32
    %c7_i32_66 = arith.constant 7 : i32
    %202 = arith.subi %c7_i32_66, %c5_i32 : i32
    %203 = arith.select %12, %202, %c5_i32 : i32
    %204 = arith.index_cast %203 : i32 to index
    %c0_67 = arith.constant 0 : index
    %c0_68 = arith.constant 0 : index
    %205 = vector.load %arg6[%204, %c0_67, %c0_68] : memref<8x8x8xf32, #tpu.memory_space<vmem>>, vector<1x8x8xf32>
    %206 = vector.shape_cast %205 : vector<1x8x8xf32> to vector<8x8xf32>
    %207 = arith.truncf %197 : vector<8x2xf32> to vector<8x2xbf16>
    %cst_69 = arith.constant dense<0.000000e+00> : vector<8x8xf32>
    %208 = tpu.matmul %207, %14, %cst_69 {dimension_numbers = #tpu.dot_dimension_numbers<[1], [0], [0], [1], [0, 0, 1, 1], [], []>} : vector<8x2xbf16>, vector<2x8xbf16>, vector<8x8xf32> -> vector<8x8xf32>
    %209 = arith.addf %206, %208 : vector<8x8xf32>
    %210 = vector.extract_strided_slice %209 {offsets = [0, 0], sizes = [8, 2], strides = [1, 1]} : vector<8x8xf32> to vector<8x2xf32>
    %211 = arith.negf %210 : vector<8x2xf32>
    %212 = math.exp %211 : vector<8x2xf32>
    %cst_70 = arith.constant 1.000000e+00 : f32
    %213 = vector.broadcast %cst_70 : f32 to vector<8x2xf32>
    %214 = arith.addf %213, %212 : vector<8x2xf32>
    %215 = arith.divf %213, %214 : vector<8x2xf32>
    %216 = vector.extract_strided_slice %209 {offsets = [0, 2], sizes = [8, 2], strides = [1, 1]} : vector<8x8xf32> to vector<8x2xf32>
    %217 = arith.negf %216 : vector<8x2xf32>
    %218 = math.exp %217 : vector<8x2xf32>
    %cst_71 = arith.constant 1.000000e+00 : f32
    %219 = vector.broadcast %cst_71 : f32 to vector<8x2xf32>
    %220 = arith.addf %219, %218 : vector<8x2xf32>
    %221 = arith.divf %219, %220 : vector<8x2xf32>
    %222 = vector.extract_strided_slice %209 {offsets = [0, 4], sizes = [8, 2], strides = [1, 1]} : vector<8x8xf32> to vector<8x2xf32>
    %223 = math.tanh %222 : vector<8x2xf32>
    %224 = vector.extract_strided_slice %209 {offsets = [0, 6], sizes = [8, 2], strides = [1, 1]} : vector<8x8xf32> to vector<8x2xf32>
    %225 = arith.negf %224 : vector<8x2xf32>
    %226 = math.exp %225 : vector<8x2xf32>
    %cst_72 = arith.constant 1.000000e+00 : f32
    %227 = vector.broadcast %cst_72 : f32 to vector<8x2xf32>
    %228 = arith.addf %227, %226 : vector<8x2xf32>
    %229 = arith.divf %227, %228 : vector<8x2xf32>
    %230 = arith.mulf %221, %195 : vector<8x2xf32>
    %231 = arith.mulf %215, %223 : vector<8x2xf32>
    %232 = arith.addf %230, %231 : vector<8x2xf32>
    %233 = math.tanh %232 : vector<8x2xf32>
    %234 = arith.mulf %229, %233 : vector<8x2xf32>
    %c0_73 = arith.constant 0 : index
    %235 = arith.index_cast %203 : i32 to index
    %c0_74 = arith.constant 0 : index
    %c0_75 = arith.constant 0 : index
    %236 = vector.load %arg5[%c0_73, %235, %c0_74, %c0_75] : memref<1x8x8x2xf32, #tpu.memory_space<vmem>>, vector<1x1x8x2xf32>
    %237 = vector.shape_cast %236 : vector<1x1x8x2xf32> to vector<8x2xf32>
    %238 = vector.shape_cast %234 : vector<8x2xf32> to vector<1x1x8x2xf32>
    tpu.vector_store %arg5[%c0_73, %235, %c0_74, %c0_75], %238 {strides = array<i32>} : memref<1x8x8x2xf32, #tpu.memory_space<vmem>>, vector<1x1x8x2xf32>,
    %c6_i32 = arith.constant 6 : i32
    %c7_i32_76 = arith.constant 7 : i32
    %239 = arith.subi %c7_i32_76, %c6_i32 : i32
    %240 = arith.select %12, %239, %c6_i32 : i32
    %241 = arith.index_cast %240 : i32 to index
    %c0_77 = arith.constant 0 : index
    %c0_78 = arith.constant 0 : index
    %242 = vector.load %arg6[%241, %c0_77, %c0_78] : memref<8x8x8xf32, #tpu.memory_space<vmem>>, vector<1x8x8xf32>
    %243 = vector.shape_cast %242 : vector<1x8x8xf32> to vector<8x8xf32>
    %244 = arith.truncf %234 : vector<8x2xf32> to vector<8x2xbf16>
    %cst_79 = arith.constant dense<0.000000e+00> : vector<8x8xf32>
    %245 = tpu.matmul %244, %14, %cst_79 {dimension_numbers = #tpu.dot_dimension_numbers<[1], [0], [0], [1], [0, 0, 1, 1], [], []>} : vector<8x2xbf16>, vector<2x8xbf16>, vector<8x8xf32> -> vector<8x8xf32>
    %246 = arith.addf %243, %245 : vector<8x8xf32>
    %247 = vector.extract_strided_slice %246 {offsets = [0, 0], sizes = [8, 2], strides = [1, 1]} : vector<8x8xf32> to vector<8x2xf32>
    %248 = arith.negf %247 : vector<8x2xf32>
    %249 = math.exp %248 : vector<8x2xf32>
    %cst_80 = arith.constant 1.000000e+00 : f32
    %250 = vector.broadcast %cst_80 : f32 to vector<8x2xf32>
    %251 = arith.addf %250, %249 : vector<8x2xf32>
    %252 = arith.divf %250, %251 : vector<8x2xf32>
    %253 = vector.extract_strided_slice %246 {offsets = [0, 2], sizes = [8, 2], strides = [1, 1]} : vector<8x8xf32> to vector<8x2xf32>
    %254 = arith.negf %253 : vector<8x2xf32>
    %255 = math.exp %254 : vector<8x2xf32>
    %cst_81 = arith.constant 1.000000e+00 : f32
    %256 = vector.broadcast %cst_81 : f32 to vector<8x2xf32>
    %257 = arith.addf %256, %255 : vector<8x2xf32>
    %258 = arith.divf %256, %257 : vector<8x2xf32>
    %259 = vector.extract_strided_slice %246 {offsets = [0, 4], sizes = [8, 2], strides = [1, 1]} : vector<8x8xf32> to vector<8x2xf32>
    %260 = math.tanh %259 : vector<8x2xf32>
    %261 = vector.extract_strided_slice %246 {offsets = [0, 6], sizes = [8, 2], strides = [1, 1]} : vector<8x8xf32> to vector<8x2xf32>
    %262 = arith.negf %261 : vector<8x2xf32>
    %263 = math.exp %262 : vector<8x2xf32>
    %cst_82 = arith.constant 1.000000e+00 : f32
    %264 = vector.broadcast %cst_82 : f32 to vector<8x2xf32>
    %265 = arith.addf %264, %263 : vector<8x2xf32>
    %266 = arith.divf %264, %265 : vector<8x2xf32>
    %267 = arith.mulf %258, %232 : vector<8x2xf32>
    %268 = arith.mulf %252, %260 : vector<8x2xf32>
    %269 = arith.addf %267, %268 : vector<8x2xf32>
    %270 = math.tanh %269 : vector<8x2xf32>
    %271 = arith.mulf %266, %270 : vector<8x2xf32>
    %c0_83 = arith.constant 0 : index
    %272 = arith.index_cast %240 : i32 to index
    %c0_84 = arith.constant 0 : index
    %c0_85 = arith.constant 0 : index
    %273 = vector.load %arg5[%c0_83, %272, %c0_84, %c0_85] : memref<1x8x8x2xf32, #tpu.memory_space<vmem>>, vector<1x1x8x2xf32>
    %274 = vector.shape_cast %273 : vector<1x1x8x2xf32> to vector<8x2xf32>
    %275 = vector.shape_cast %271 : vector<8x2xf32> to vector<1x1x8x2xf32>
    tpu.vector_store %arg5[%c0_83, %272, %c0_84, %c0_85], %275 {strides = array<i32>} : memref<1x8x8x2xf32, #tpu.memory_space<vmem>>, vector<1x1x8x2xf32>,
    %c7_i32_86 = arith.constant 7 : i32
    %c7_i32_87 = arith.constant 7 : i32
    %276 = arith.subi %c7_i32_87, %c7_i32_86 : i32
    %277 = arith.select %12, %276, %c7_i32_86 : i32
    %278 = arith.index_cast %277 : i32 to index
    %c0_88 = arith.constant 0 : index
    %c0_89 = arith.constant 0 : index
    %279 = vector.load %arg6[%278, %c0_88, %c0_89] : memref<8x8x8xf32, #tpu.memory_space<vmem>>, vector<1x8x8xf32>
    %280 = vector.shape_cast %279 : vector<1x8x8xf32> to vector<8x8xf32>
    %281 = arith.truncf %271 : vector<8x2xf32> to vector<8x2xbf16>
    %cst_90 = arith.constant dense<0.000000e+00> : vector<8x8xf32>
    %282 = tpu.matmul %281, %14, %cst_90 {dimension_numbers = #tpu.dot_dimension_numbers<[1], [0], [0], [1], [0, 0, 1, 1], [], []>} : vector<8x2xbf16>, vector<2x8xbf16>, vector<8x8xf32> -> vector<8x8xf32>
    %283 = arith.addf %280, %282 : vector<8x8xf32>
    %284 = vector.extract_strided_slice %283 {offsets = [0, 0], sizes = [8, 2], strides = [1, 1]} : vector<8x8xf32> to vector<8x2xf32>
    %285 = arith.negf %284 : vector<8x2xf32>
    %286 = math.exp %285 : vector<8x2xf32>
    %cst_91 = arith.constant 1.000000e+00 : f32
    %287 = vector.broadcast %cst_91 : f32 to vector<8x2xf32>
    %288 = arith.addf %287, %286 : vector<8x2xf32>
    %289 = arith.divf %287, %288 : vector<8x2xf32>
    %290 = vector.extract_strided_slice %283 {offsets = [0, 2], sizes = [8, 2], strides = [1, 1]} : vector<8x8xf32> to vector<8x2xf32>
    %291 = arith.negf %290 : vector<8x2xf32>
    %292 = math.exp %291 : vector<8x2xf32>
    %cst_92 = arith.constant 1.000000e+00 : f32
    %293 = vector.broadcast %cst_92 : f32 to vector<8x2xf32>
    %294 = arith.addf %293, %292 : vector<8x2xf32>
    %295 = arith.divf %293, %294 : vector<8x2xf32>
    %296 = vector.extract_strided_slice %283 {offsets = [0, 4], sizes = [8, 2], strides = [1, 1]} : vector<8x8xf32> to vector<8x2xf32>
    %297 = math.tanh %296 : vector<8x2xf32>
    %298 = vector.extract_strided_slice %283 {offsets = [0, 6], sizes = [8, 2], strides = [1, 1]} : vector<8x8xf32> to vector<8x2xf32>
    %299 = arith.negf %298 : vector<8x2xf32>
    %300 = math.exp %299 : vector<8x2xf32>
    %cst_93 = arith.constant 1.000000e+00 : f32
    %301 = vector.broadcast %cst_93 : f32 to vector<8x2xf32>
    %302 = arith.addf %301, %300 : vector<8x2xf32>
    %303 = arith.divf %301, %302 : vector<8x2xf32>
    %304 = arith.mulf %295, %269 : vector<8x2xf32>
    %305 = arith.mulf %289, %297 : vector<8x2xf32>
    %306 = arith.addf %304, %305 : vector<8x2xf32>
    %307 = math.tanh %306 : vector<8x2xf32>
    %308 = arith.mulf %303, %307 : vector<8x2xf32>
    %c0_94 = arith.constant 0 : index
    %309 = arith.index_cast %277 : i32 to index
    %c0_95 = arith.constant 0 : index
    %c0_96 = arith.constant 0 : index
    %310 = vector.load %arg5[%c0_94, %309, %c0_95, %c0_96] : memref<1x8x8x2xf32, #tpu.memory_space<vmem>>, vector<1x1x8x2xf32>
    %311 = vector.shape_cast %310 : vector<1x1x8x2xf32> to vector<8x2xf32>
    %312 = vector.shape_cast %308 : vector<8x2xf32> to vector<1x1x8x2xf32>
    tpu.vector_store %arg5[%c0_94, %309, %c0_95, %c0_96], %312 {strides = array<i32>} : memref<1x8x8x2xf32, #tpu.memory_space<vmem>>, vector<1x1x8x2xf32>,
    %c8_i32 = arith.constant 8 : i32
    return
  }
  func.func @transform_0(%arg0: i32) -> (i32, i32, i32) {
    %c0_i32 = arith.constant 0 : i32
    %c0_i32_0 = arith.constant 0 : i32
    %c0_i32_1 = arith.constant 0 : i32
    %c0_i32_2 = arith.constant 0 : i32
    return %c0_i32, %c0_i32_0, %c0_i32_1 : i32, i32, i32
  }
  func.func @transform_1(%arg0: i32) -> (i32, i32, i32) {
    %c0_i32 = arith.constant 0 : i32
    %c0_i32_0 = arith.constant 0 : i32
    %c0_i32_1 = arith.constant 0 : i32
    return %arg0, %c0_i32, %c0_i32_0 : i32, i32, i32
  }
  func.func @transform_2(%arg0: i32) -> (i32, i32, i32) {
    %c0_i32 = arith.constant 0 : i32
    %c0_i32_0 = arith.constant 0 : i32
    %c0_i32_1 = arith.constant 0 : i32
    return %arg0, %c0_i32, %c0_i32_0 : i32, i32, i32
  }
  func.func @transform_3(%arg0: i32) -> (i32, i32, i32) {
    %c0_i32 = arith.constant 0 : i32
    %c0_i32_0 = arith.constant 0 : i32
    %c0_i32_1 = arith.constant 0 : i32
    return %arg0, %c0_i32, %c0_i32_0 : i32, i32, i32
  }
  func.func @transform_4(%arg0: i32) -> (i32, i32, i32, i32) {
    %c0_i32 = arith.constant 0 : i32
    %c0_i32_0 = arith.constant 0 : i32
    %c0_i32_1 = arith.constant 0 : i32
    %c0_i32_2 = arith.constant 0 : i32
    return %arg0, %c0_i32, %c0_i32_0, %c0_i32_1 : i32, i32, i32, i32
  }
}

module attributes {stable_mosaic.version = 11 : i64} {
  func.func @kernel(%arg0: i32, %arg1: memref<8x8x4xf32, #tpu.memory_space<vmem>>, %arg2: memref<1x4x8xbf16, #tpu.memory_space<vmem>>, %arg3: memref<1x2x8xbf16, #tpu.memory_space<vmem>>, %arg4: memref<1x1x8xf32, #tpu.memory_space<vmem>>, %arg5: memref<1x8x8x2xf32, #tpu.memory_space<vmem>>, %arg6: memref<8x8x8xf32, #tpu.memory_space<vmem>>) attributes {dimension_semantics = [#tpu.dimension_semantics<parallel>], iteration_bounds = array<i64: 2>, scalar_prefetch = 0 : i64, scratch_operands = 1 : i64, tpu.core_type = #tpu.core_type<tc>, window_params = [{pipeline_mode = #tpu.pipeline_mode<synchronous>, transform_indices = @transform_0, window_bounds = array<i64: 8, 8, 4>}, {transform_indices = @transform_1, window_bounds = array<i64: 1, 4, 8>}, {transform_indices = @transform_2, window_bounds = array<i64: 1, 2, 8>}, {transform_indices = @transform_3, window_bounds = array<i64: 1, 1, 8>}, {transform_indices = @transform_4, window_bounds = array<i64: 1, 8, 8, 2>}]} {
    %c0 = arith.constant 0 : index
    %c0_0 = arith.constant 0 : index
    %c0_1 = arith.constant 0 : index
    %0 = vector.load %arg1[%c0, %c0_0, %c0_1] : memref<8x8x4xf32, #tpu.memory_space<vmem>>, vector<8x8x4xf32>
    %1 = vector.shape_cast %0 : vector<8x8x4xf32> to vector<64x4xf32>
    %2 = arith.truncf %1 : vector<64x4xf32> to vector<64x4xbf16>
    %c0_2 = arith.constant 0 : index
    %c0_3 = arith.constant 0 : index
    %c0_4 = arith.constant 0 : index
    %3 = vector.load %arg2[%c0_2, %c0_3, %c0_4] : memref<1x4x8xbf16, #tpu.memory_space<vmem>>, vector<1x4x8xbf16>
    %4 = vector.shape_cast %3 : vector<1x4x8xbf16> to vector<4x8xbf16>
    %cst = arith.constant dense<0.000000e+00> : vector<64x8xf32>
    %5 = tpu.matmul %2, %4, %cst {dimension_numbers = #tpu.dot_dimension_numbers<[1], [0], [0], [1], [0, 0, 1, 1], [], []>} : vector<64x4xbf16>, vector<4x8xbf16>, vector<64x8xf32> -> vector<64x8xf32>
    %c0_5 = arith.constant 0 : index
    %c0_6 = arith.constant 0 : index
    %c0_7 = arith.constant 0 : index
    %6 = vector.load %arg4[%c0_5, %c0_6, %c0_7] : memref<1x1x8xf32, #tpu.memory_space<vmem>>, vector<1x1x8xf32>
    %7 = vector.shape_cast %6 : vector<1x1x8xf32> to vector<1x8xf32>
    %8 = vector.broadcast %7 : vector<1x8xf32> to vector<64x8xf32>
    %9 = arith.addf %5, %8 : vector<64x8xf32>
    %10 = vector.shape_cast %9 : vector<64x8xf32> to vector<8x8x8xf32>
    %c0_8 = arith.constant 0 : index
    %c0_9 = arith.constant 0 : index
    %c0_10 = arith.constant 0 : index
    %11 = vector.load %arg6[%c0_8, %c0_9, %c0_10] : memref<8x8x8xf32, #tpu.memory_space<vmem>>, vector<8x8x8xf32>
    tpu.vector_store %arg6[%c0_8, %c0_9, %c0_10], %10 {strides = array<i32>} : memref<8x8x8xf32, #tpu.memory_space<vmem>>, vector<8x8x8xf32>,
    %c1_i32 = arith.constant 1 : i32
    %12 = arith.cmpi eq, %arg0, %c1_i32 : i32
    %c0_11 = arith.constant 0 : index
    %c0_12 = arith.constant 0 : index
    %c0_13 = arith.constant 0 : index
    %13 = vector.load %arg3[%c0_11, %c0_12, %c0_13] : memref<1x2x8xbf16, #tpu.memory_space<vmem>>, vector<1x2x8xbf16>
    %14 = vector.shape_cast %13 : vector<1x2x8xbf16> to vector<2x8xbf16>
    %cst_14 = arith.constant 0.000000e+00 : f32
    %15 = vector.broadcast %cst_14 : f32 to vector<8x2xf32>
    %cst_15 = arith.constant 0.000000e+00 : f32
    %16 = vector.broadcast %cst_15 : f32 to vector<8x2xf32>
    %c0_i32 = arith.constant 0 : i32
    %c7_i32 = arith.constant 7 : i32
    %17 = arith.subi %c7_i32, %c0_i32 : i32
    %18 = arith.select %12, %17, %c0_i32 : i32
    %19 = arith.index_cast %18 : i32 to index
    %c0_16 = arith.constant 0 : index
    %c0_17 = arith.constant 0 : index
    %20 = vector.load %arg6[%19, %c0_16, %c0_17] : memref<8x8x8xf32, #tpu.memory_space<vmem>>, vector<1x8x8xf32>
    %21 = vector.shape_cast %20 : vector<1x8x8xf32> to vector<8x8xf32>
    %22 = arith.truncf %15 : vector<8x2xf32> to vector<8x2xbf16>
    %cst_18 = arith.constant dense<0.000000e+00> : vector<8x8xf32>
    %23 = tpu.matmul %22, %14, %cst_18 {dimension_numbers = #tpu.dot_dimension_numbers<[1], [0], [0], [1], [0, 0, 1, 1], [], []>} : vector<8x2xbf16>, vector<2x8xbf16>, vector<8x8xf32> -> vector<8x8xf32>
    %24 = arith.addf %21, %23 : vector<8x8xf32>
    %25 = vector.extract_strided_slice %24 {offsets = [0, 0], sizes = [8, 2], strides = [1, 1]} : vector<8x8xf32> to vector<8x2xf32>
    %26 = arith.negf %25 : vector<8x2xf32>
    %27 = math.exp %26 : vector<8x2xf32>
    %cst_19 = arith.constant 1.000000e+00 : f32
    %28 = vector.broadcast %cst_19 : f32 to vector<8x2xf32>
    %29 = arith.addf %28, %27 : vector<8x2xf32>
    %30 = arith.divf %28, %29 : vector<8x2xf32>
    %31 = vector.extract_strided_slice %24 {offsets = [0, 2], sizes = [8, 2], strides = [1, 1]} : vector<8x8xf32> to vector<8x2xf32>
    %32 = arith.negf %31 : vector<8x2xf32>
    %33 = math.exp %32 : vector<8x2xf32>
    %cst_20 = arith.constant 1.000000e+00 : f32
    %34 = vector.broadcast %cst_20 : f32 to vector<8x2xf32>
    %35 = arith.addf %34, %33 : vector<8x2xf32>
    %36 = arith.divf %34, %35 : vector<8x2xf32>
    %37 = vector.extract_strided_slice %24 {offsets = [0, 4], sizes = [8, 2], strides = [1, 1]} : vector<8x8xf32> to vector<8x2xf32>
    %38 = math.tanh %37 : vector<8x2xf32>
    %39 = vector.extract_strided_slice %24 {offsets = [0, 6], sizes = [8, 2], strides = [1, 1]} : vector<8x8xf32> to vector<8x2xf32>
    %40 = arith.negf %39 : vector<8x2xf32>
    %41 = math.exp %40 : vector<8x2xf32>
    %cst_21 = arith.constant 1.000000e+00 : f32
    %42 = vector.broadcast %cst_21 : f32 to vector<8x2xf32>
    %43 = arith.addf %42, %41 : vector<8x2xf32>
    %44 = arith.divf %42, %43 : vector<8x2xf32>
    %45 = arith.mulf %36, %16 : vector<8x2xf32>
    %46 = arith.mulf %30, %38 : vector<8x2xf32>
    %47 = arith.addf %45, %46 : vector<8x2xf32>
    %48 = math.tanh %47 : vector<8x2xf32>
    %49 = arith.mulf %44, %48 : vector<8x2xf32>
    %c0_22 = arith.constant 0 : index
    %50 = arith.index_cast %18 : i32 to index
    %c0_23 = arith.constant 0 : index
    %c0_24 = arith.constant 0 : index
    %51 = vector.load %arg5[%c0_22, %50, %c0_23, %c0_24] : memref<1x8x8x2xf32, #tpu.memory_space<vmem>>, vector<1x1x8x2xf32>
    %52 = vector.shape_cast %51 : vector<1x1x8x2xf32> to vector<8x2xf32>
    %53 = vector.shape_cast %49 : vector<8x2xf32> to vector<1x1x8x2xf32>
    tpu.vector_store %arg5[%c0_22, %50, %c0_23, %c0_24], %53 {strides = array<i32>} : memref<1x8x8x2xf32, #tpu.memory_space<vmem>>, vector<1x1x8x2xf32>,
    %c1_i32_25 = arith.constant 1 : i32
    %c7_i32_26 = arith.constant 7 : i32
    %54 = arith.subi %c7_i32_26, %c1_i32_25 : i32
    %55 = arith.select %12, %54, %c1_i32_25 : i32
    %56 = arith.index_cast %55 : i32 to index
    %c0_27 = arith.constant 0 : index
    %c0_28 = arith.constant 0 : index
    %57 = vector.load %arg6[%56, %c0_27, %c0_28] : memref<8x8x8xf32, #tpu.memory_space<vmem>>, vector<1x8x8xf32>
    %58 = vector.shape_cast %57 : vector<1x8x8xf32> to vector<8x8xf32>
    %59 = arith.truncf %49 : vector<8x2xf32> to vector<8x2xbf16>
    %cst_29 = arith.constant dense<0.000000e+00> : vector<8x8xf32>
    %60 = tpu.matmul %59, %14, %cst_29 {dimension_numbers = #tpu.dot_dimension_numbers<[1], [0], [0], [1], [0, 0, 1, 1], [], []>} : vector<8x2xbf16>, vector<2x8xbf16>, vector<8x8xf32> -> vector<8x8xf32>
    %61 = arith.addf %58, %60 : vector<8x8xf32>
    %62 = vector.extract_strided_slice %61 {offsets = [0, 0], sizes = [8, 2], strides = [1, 1]} : vector<8x8xf32> to vector<8x2xf32>
    %63 = arith.negf %62 : vector<8x2xf32>
    %64 = math.exp %63 : vector<8x2xf32>
    %cst_30 = arith.constant 1.000000e+00 : f32
    %65 = vector.broadcast %cst_30 : f32 to vector<8x2xf32>
    %66 = arith.addf %65, %64 : vector<8x2xf32>
    %67 = arith.divf %65, %66 : vector<8x2xf32>
    %68 = vector.extract_strided_slice %61 {offsets = [0, 2], sizes = [8, 2], strides = [1, 1]} : vector<8x8xf32> to vector<8x2xf32>
    %69 = arith.negf %68 : vector<8x2xf32>
    %70 = math.exp %69 : vector<8x2xf32>
    %cst_31 = arith.constant 1.000000e+00 : f32
    %71 = vector.broadcast %cst_31 : f32 to vector<8x2xf32>
    %72 = arith.addf %71, %70 : vector<8x2xf32>
    %73 = arith.divf %71, %72 : vector<8x2xf32>
    %74 = vector.extract_strided_slice %61 {offsets = [0, 4], sizes = [8, 2], strides = [1, 1]} : vector<8x8xf32> to vector<8x2xf32>
    %75 = math.tanh %74 : vector<8x2xf32>
    %76 = vector.extract_strided_slice %61 {offsets = [0, 6], sizes = [8, 2], strides = [1, 1]} : vector<8x8xf32> to vector<8x2xf32>
    %77 = arith.negf %76 : vector<8x2xf32>
    %78 = math.exp %77 : vector<8x2xf32>
    %cst_32 = arith.constant 1.000000e+00 : f32
    %79 = vector.broadcast %cst_32 : f32 to vector<8x2xf32>
    %80 = arith.addf %79, %78 : vector<8x2xf32>
    %81 = arith.divf %79, %80 : vector<8x2xf32>
    %82 = arith.mulf %73, %47 : vector<8x2xf32>
    %83 = arith.mulf %67, %75 : vector<8x2xf32>
    %84 = arith.addf %82, %83 : vector<8x2xf32>
    %85 = math.tanh %84 : vector<8x2xf32>
    %86 = arith.mulf %81, %85 : vector<8x2xf32>
    %c0_33 = arith.constant 0 : index
    %87 = arith.index_cast %55 : i32 to index
    %c0_34 = arith.constant 0 : index
    %c0_35 = arith.constant 0 : index
    %88 = vector.load %arg5[%c0_33, %87, %c0_34, %c0_35] : memref<1x8x8x2xf32, #tpu.memory_space<vmem>>, vector<1x1x8x2xf32>
    %89 = vector.shape_cast %88 : vector<1x1x8x2xf32> to vector<8x2xf32>
    %90 = vector.shape_cast %86 : vector<8x2xf32> to vector<1x1x8x2xf32>
    tpu.vector_store %arg5[%c0_33, %87, %c0_34, %c0_35], %90 {strides = array<i32>} : memref<1x8x8x2xf32, #tpu.memory_space<vmem>>, vector<1x1x8x2xf32>,
    %c2_i32 = arith.constant 2 : i32
    %c7_i32_36 = arith.constant 7 : i32
    %91 = arith.subi %c7_i32_36, %c2_i32 : i32
    %92 = arith.select %12, %91, %c2_i32 : i32
    %93 = arith.index_cast %92 : i32 to index
    %c0_37 = arith.constant 0 : index
    %c0_38 = arith.constant 0 : index
    %94 = vector.load %arg6[%93, %c0_37, %c0_38] : memref<8x8x8xf32, #tpu.memory_space<vmem>>, vector<1x8x8xf32>
    %95 = vector.shape_cast %94 : vector<1x8x8xf32> to vector<8x8xf32>
    %96 = arith.truncf %86 : vector<8x2xf32> to vector<8x2xbf16>
    %cst_39 = arith.constant dense<0.000000e+00> : vector<8x8xf32>
    %97 = tpu.matmul %96, %14, %cst_39 {dimension_numbers = #tpu.dot_dimension_numbers<[1], [0], [0], [1], [0, 0, 1, 1], [], []>} : vector<8x2xbf16>, vector<2x8xbf16>, vector<8x8xf32> -> vector<8x8xf32>
    %98 = arith.addf %95, %97 : vector<8x8xf32>
    %99 = vector.extract_strided_slice %98 {offsets = [0, 0], sizes = [8, 2], strides = [1, 1]} : vector<8x8xf32> to vector<8x2xf32>
    %100 = arith.negf %99 : vector<8x2xf32>
    %101 = math.exp %100 : vector<8x2xf32>
    %cst_40 = arith.constant 1.000000e+00 : f32
    %102 = vector.broadcast %cst_40 : f32 to vector<8x2xf32>
    %103 = arith.addf %102, %101 : vector<8x2xf32>
    %104 = arith.divf %102, %103 : vector<8x2xf32>
    %105 = vector.extract_strided_slice %98 {offsets = [0, 2], sizes = [8, 2], strides = [1, 1]} : vector<8x8xf32> to vector<8x2xf32>
    %106 = arith.negf %105 : vector<8x2xf32>
    %107 = math.exp %106 : vector<8x2xf32>
    %cst_41 = arith.constant 1.000000e+00 : f32
    %108 = vector.broadcast %cst_41 : f32 to vector<8x2xf32>
    %109 = arith.addf %108, %107 : vector<8x2xf32>
    %110 = arith.divf %108, %109 : vector<8x2xf32>
    %111 = vector.extract_strided_slice %98 {offsets = [0, 4], sizes = [8, 2], strides = [1, 1]} : vector<8x8xf32> to vector<8x2xf32>
    %112 = math.tanh %111 : vector<8x2xf32>
    %113 = vector.extract_strided_slice %98 {offsets = [0, 6], sizes = [8, 2], strides = [1, 1]} : vector<8x8xf32> to vector<8x2xf32>
    %114 = arith.negf %113 : vector<8x2xf32>
    %115 = math.exp %114 : vector<8x2xf32>
    %cst_42 = arith.constant 1.000000e+00 : f32
    %116 = vector.broadcast %cst_42 : f32 to vector<8x2xf32>
    %117 = arith.addf %116, %115 : vector<8x2xf32>
    %118 = arith.divf %116, %117 : vector<8x2xf32>
    %119 = arith.mulf %110, %84 : vector<8x2xf32>
    %120 = arith.mulf %104, %112 : vector<8x2xf32>
    %121 = arith.addf %119, %120 : vector<8x2xf32>
    %122 = math.tanh %121 : vector<8x2xf32>
    %123 = arith.mulf %118, %122 : vector<8x2xf32>
    %c0_43 = arith.constant 0 : index
    %124 = arith.index_cast %92 : i32 to index
    %c0_44 = arith.constant 0 : index
    %c0_45 = arith.constant 0 : index
    %125 = vector.load %arg5[%c0_43, %124, %c0_44, %c0_45] : memref<1x8x8x2xf32, #tpu.memory_space<vmem>>, vector<1x1x8x2xf32>
    %126 = vector.shape_cast %125 : vector<1x1x8x2xf32> to vector<8x2xf32>
    %127 = vector.shape_cast %123 : vector<8x2xf32> to vector<1x1x8x2xf32>
    tpu.vector_store %arg5[%c0_43, %124, %c0_44, %c0_45], %127 {strides = array<i32>} : memref<1x8x8x2xf32, #tpu.memory_space<vmem>>, vector<1x1x8x2xf32>,
    %c3_i32 = arith.constant 3 : i32
    %c7_i32_46 = arith.constant 7 : i32
    %128 = arith.subi %c7_i32_46, %c3_i32 : i32
    %129 = arith.select %12, %128, %c3_i32 : i32
    %130 = arith.index_cast %129 : i32 to index
    %c0_47 = arith.constant 0 : index
    %c0_48 = arith.constant 0 : index
    %131 = vector.load %arg6[%130, %c0_47, %c0_48] : memref<8x8x8xf32, #tpu.memory_space<vmem>>, vector<1x8x8xf32>
    %132 = vector.shape_cast %131 : vector<1x8x8xf32> to vector<8x8xf32>
    %133 = arith.truncf %123 : vector<8x2xf32> to vector<8x2xbf16>
    %cst_49 = arith.constant dense<0.000000e+00> : vector<8x8xf32>
    %134 = tpu.matmul %133, %14, %cst_49 {dimension_numbers = #tpu.dot_dimension_numbers<[1], [0], [0], [1], [0, 0, 1, 1], [], []>} : vector<8x2xbf16>, vector<2x8xbf16>, vector<8x8xf32> -> vector<8x8xf32>
    %135 = arith.addf %132, %134 : vector<8x8xf32>
    %136 = vector.extract_strided_slice %135 {offsets = [0, 0], sizes = [8, 2], strides = [1, 1]} : vector<8x8xf32> to vector<8x2xf32>
    %137 = arith.negf %136 : vector<8x2xf32>
    %138 = math.exp %137 : vector<8x2xf32>
    %cst_50 = arith.constant 1.000000e+00 : f32
    %139 = vector.broadcast %cst_50 : f32 to vector<8x2xf32>
    %140 = arith.addf %139, %138 : vector<8x2xf32>
    %141 = arith.divf %139, %140 : vector<8x2xf32>
    %142 = vector.extract_strided_slice %135 {offsets = [0, 2], sizes = [8, 2], strides = [1, 1]} : vector<8x8xf32> to vector<8x2xf32>
    %143 = arith.negf %142 : vector<8x2xf32>
    %144 = math.exp %143 : vector<8x2xf32>
    %cst_51 = arith.constant 1.000000e+00 : f32
    %145 = vector.broadcast %cst_51 : f32 to vector<8x2xf32>
    %146 = arith.addf %145, %144 : vector<8x2xf32>
    %147 = arith.divf %145, %146 : vector<8x2xf32>
    %148 = vector.extract_strided_slice %135 {offsets = [0, 4], sizes = [8, 2], strides = [1, 1]} : vector<8x8xf32> to vector<8x2xf32>
    %149 = math.tanh %148 : vector<8x2xf32>
    %150 = vector.extract_strided_slice %135 {offsets = [0, 6], sizes = [8, 2], strides = [1, 1]} : vector<8x8xf32> to vector<8x2xf32>
    %151 = arith.negf %150 : vector<8x2xf32>
    %152 = math.exp %151 : vector<8x2xf32>
    %cst_52 = arith.constant 1.000000e+00 : f32
    %153 = vector.broadcast %cst_52 : f32 to vector<8x2xf32>
    %154 = arith.addf %153, %152 : vector<8x2xf32>
    %155 = arith.divf %153, %154 : vector<8x2xf32>
    %156 = arith.mulf %147, %121 : vector<8x2xf32>
    %157 = arith.mulf %141, %149 : vector<8x2xf32>
    %158 = arith.addf %156, %157 : vector<8x2xf32>
    %159 = math.tanh %158 : vector<8x2xf32>
    %160 = arith.mulf %155, %159 : vector<8x2xf32>
    %c0_53 = arith.constant 0 : index
    %161 = arith.index_cast %129 : i32 to index
    %c0_54 = arith.constant 0 : index
    %c0_55 = arith.constant 0 : index
    %162 = vector.load %arg5[%c0_53, %161, %c0_54, %c0_55] : memref<1x8x8x2xf32, #tpu.memory_space<vmem>>, vector<1x1x8x2xf32>
    %163 = vector.shape_cast %162 : vector<1x1x8x2xf32> to vector<8x2xf32>
    %164 = vector.shape_cast %160 : vector<8x2xf32> to vector<1x1x8x2xf32>
    tpu.vector_store %arg5[%c0_53, %161, %c0_54, %c0_55], %164 {strides = array<i32>} : memref<1x8x8x2xf32, #tpu.memory_space<vmem>>, vector<1x1x8x2xf32>,
    %c4_i32 = arith.constant 4 : i32
    %c7_i32_56 = arith.constant 7 : i32
    %165 = arith.subi %c7_i32_56, %c4_i32 : i32
    %166 = arith.select %12, %165, %c4_i32 : i32
    %167 = arith.index_cast %166 : i32 to index
    %c0_57 = arith.constant 0 : index
    %c0_58 = arith.constant 0 : index
    %168 = vector.load %arg6[%167, %c0_57, %c0_58] : memref<8x8x8xf32, #tpu.memory_space<vmem>>, vector<1x8x8xf32>
    %169 = vector.shape_cast %168 : vector<1x8x8xf32> to vector<8x8xf32>
    %170 = arith.truncf %160 : vector<8x2xf32> to vector<8x2xbf16>
    %cst_59 = arith.constant dense<0.000000e+00> : vector<8x8xf32>
    %171 = tpu.matmul %170, %14, %cst_59 {dimension_numbers = #tpu.dot_dimension_numbers<[1], [0], [0], [1], [0, 0, 1, 1], [], []>} : vector<8x2xbf16>, vector<2x8xbf16>, vector<8x8xf32> -> vector<8x8xf32>
    %172 = arith.addf %169, %171 : vector<8x8xf32>
    %173 = vector.extract_strided_slice %172 {offsets = [0, 0], sizes = [8, 2], strides = [1, 1]} : vector<8x8xf32> to vector<8x2xf32>
    %174 = arith.negf %173 : vector<8x2xf32>
    %175 = math.exp %174 : vector<8x2xf32>
    %cst_60 = arith.constant 1.000000e+00 : f32
    %176 = vector.broadcast %cst_60 : f32 to vector<8x2xf32>
    %177 = arith.addf %176, %175 : vector<8x2xf32>
    %178 = arith.divf %176, %177 : vector<8x2xf32>
    %179 = vector.extract_strided_slice %172 {offsets = [0, 2], sizes = [8, 2], strides = [1, 1]} : vector<8x8xf32> to vector<8x2xf32>
    %180 = arith.negf %179 : vector<8x2xf32>
    %181 = math.exp %180 : vector<8x2xf32>
    %cst_61 = arith.constant 1.000000e+00 : f32
    %182 = vector.broadcast %cst_61 : f32 to vector<8x2xf32>
    %183 = arith.addf %182, %181 : vector<8x2xf32>
    %184 = arith.divf %182, %183 : vector<8x2xf32>
    %185 = vector.extract_strided_slice %172 {offsets = [0, 4], sizes = [8, 2], strides = [1, 1]} : vector<8x8xf32> to vector<8x2xf32>
    %186 = math.tanh %185 : vector<8x2xf32>
    %187 = vector.extract_strided_slice %172 {offsets = [0, 6], sizes = [8, 2], strides = [1, 1]} : vector<8x8xf32> to vector<8x2xf32>
    %188 = arith.negf %187 : vector<8x2xf32>
    %189 = math.exp %188 : vector<8x2xf32>
    %cst_62 = arith.constant 1.000000e+00 : f32
    %190 = vector.broadcast %cst_62 : f32 to vector<8x2xf32>
    %191 = arith.addf %190, %189 : vector<8x2xf32>
    %192 = arith.divf %190, %191 : vector<8x2xf32>
    %193 = arith.mulf %184, %158 : vector<8x2xf32>
    %194 = arith.mulf %178, %186 : vector<8x2xf32>
    %195 = arith.addf %193, %194 : vector<8x2xf32>
    %196 = math.tanh %195 : vector<8x2xf32>
    %197 = arith.mulf %192, %196 : vector<8x2xf32>
    %c0_63 = arith.constant 0 : index
    %198 = arith.index_cast %166 : i32 to index
    %c0_64 = arith.constant 0 : index
    %c0_65 = arith.constant 0 : index
    %199 = vector.load %arg5[%c0_63, %198, %c0_64, %c0_65] : memref<1x8x8x2xf32, #tpu.memory_space<vmem>>, vector<1x1x8x2xf32>
    %200 = vector.shape_cast %199 : vector<1x1x8x2xf32> to vector<8x2xf32>
    %201 = vector.shape_cast %197 : vector<8x2xf32> to vector<1x1x8x2xf32>
    tpu.vector_store %arg5[%c0_63, %198, %c0_64, %c0_65], %201 {strides = array<i32>} : memref<1x8x8x2xf32, #tpu.memory_space<vmem>>, vector<1x1x8x2xf32>,
    %c5_i32 = arith.constant 5 : i32
    %c7_i32_66 = arith.constant 7 : i32
    %202 = arith.subi %c7_i32_66, %c5_i32 : i32
    %203 = arith.select %12, %202, %c5_i32 : i32
    %204 = arith.index_cast %203 : i32 to index
    %c0_67 = arith.constant 0 : index
    %c0_68 = arith.constant 0 : index
    %205 = vector.load %arg6[%204, %c0_67, %c0_68] : memref<8x8x8xf32, #tpu.memory_space<vmem>>, vector<1x8x8xf32>
    %206 = vector.shape_cast %205 : vector<1x8x8xf32> to vector<8x8xf32>
    %207 = arith.truncf %197 : vector<8x2xf32> to vector<8x2xbf16>
    %cst_69 = arith.constant dense<0.000000e+00> : vector<8x8xf32>
    %208 = tpu.matmul %207, %14, %cst_69 {dimension_numbers = #tpu.dot_dimension_numbers<[1], [0], [0], [1], [0, 0, 1, 1], [], []>} : vector<8x2xbf16>, vector<2x8xbf16>, vector<8x8xf32> -> vector<8x8xf32>
    %209 = arith.addf %206, %208 : vector<8x8xf32>
    %210 = vector.extract_strided_slice %209 {offsets = [0, 0], sizes = [8, 2], strides = [1, 1]} : vector<8x8xf32> to vector<8x2xf32>
    %211 = arith.negf %210 : vector<8x2xf32>
    %212 = math.exp %211 : vector<8x2xf32>
    %cst_70 = arith.constant 1.000000e+00 : f32
    %213 = vector.broadcast %cst_70 : f32 to vector<8x2xf32>
    %214 = arith.addf %213, %212 : vector<8x2xf32>
    %215 = arith.divf %213, %214 : vector<8x2xf32>
    %216 = vector.extract_strided_slice %209 {offsets = [0, 2], sizes = [8, 2], strides = [1, 1]} : vector<8x8xf32> to vector<8x2xf32>
    %217 = arith.negf %216 : vector<8x2xf32>
    %218 = math.exp %217 : vector<8x2xf32>
    %cst_71 = arith.constant 1.000000e+00 : f32
    %219 = vector.broadcast %cst_71 : f32 to vector<8x2xf32>
    %220 = arith.addf %219, %218 : vector<8x2xf32>
    %221 = arith.divf %219, %220 : vector<8x2xf32>
    %222 = vector.extract_strided_slice %209 {offsets = [0, 4], sizes = [8, 2], strides = [1, 1]} : vector<8x8xf32> to vector<8x2xf32>
    %223 = math.tanh %222 : vector<8x2xf32>
    %224 = vector.extract_strided_slice %209 {offsets = [0, 6], sizes = [8, 2], strides = [1, 1]} : vector<8x8xf32> to vector<8x2xf32>
    %225 = arith.negf %224 : vector<8x2xf32>
    %226 = math.exp %225 : vector<8x2xf32>
    %cst_72 = arith.constant 1.000000e+00 : f32
    %227 = vector.broadcast %cst_72 : f32 to vector<8x2xf32>
    %228 = arith.addf %227, %226 : vector<8x2xf32>
    %229 = arith.divf %227, %228 : vector<8x2xf32>
    %230 = arith.mulf %221, %195 : vector<8x2xf32>
    %231 = arith.mulf %215, %223 : vector<8x2xf32>
    %232 = arith.addf %230, %231 : vector<8x2xf32>
    %233 = math.tanh %232 : vector<8x2xf32>
    %234 = arith.mulf %229, %233 : vector<8x2xf32>
    %c0_73 = arith.constant 0 : index
    %235 = arith.index_cast %203 : i32 to index
    %c0_74 = arith.constant 0 : index
    %c0_75 = arith.constant 0 : index
    %236 = vector.load %arg5[%c0_73, %235, %c0_74, %c0_75] : memref<1x8x8x2xf32, #tpu.memory_space<vmem>>, vector<1x1x8x2xf32>
    %237 = vector.shape_cast %236 : vector<1x1x8x2xf32> to vector<8x2xf32>
    %238 = vector.shape_cast %234 : vector<8x2xf32> to vector<1x1x8x2xf32>
    tpu.vector_store %arg5[%c0_73, %235, %c0_74, %c0_75], %238 {strides = array<i32>} : memref<1x8x8x2xf32, #tpu.memory_space<vmem>>, vector<1x1x8x2xf32>,
    %c6_i32 = arith.constant 6 : i32
    %c7_i32_76 = arith.constant 7 : i32
    %239 = arith.subi %c7_i32_76, %c6_i32 : i32
    %240 = arith.select %12, %239, %c6_i32 : i32
    %241 = arith.index_cast %240 : i32 to index
    %c0_77 = arith.constant 0 : index
    %c0_78 = arith.constant 0 : index
    %242 = vector.load %arg6[%241, %c0_77, %c0_78] : memref<8x8x8xf32, #tpu.memory_space<vmem>>, vector<1x8x8xf32>
    %243 = vector.shape_cast %242 : vector<1x8x8xf32> to vector<8x8xf32>
    %244 = arith.truncf %234 : vector<8x2xf32> to vector<8x2xbf16>
    %cst_79 = arith.constant dense<0.000000e+00> : vector<8x8xf32>
    %245 = tpu.matmul %244, %14, %cst_79 {dimension_numbers = #tpu.dot_dimension_numbers<[1], [0], [0], [1], [0, 0, 1, 1], [], []>} : vector<8x2xbf16>, vector<2x8xbf16>, vector<8x8xf32> -> vector<8x8xf32>
    %246 = arith.addf %243, %245 : vector<8x8xf32>
    %247 = vector.extract_strided_slice %246 {offsets = [0, 0], sizes = [8, 2], strides = [1, 1]} : vector<8x8xf32> to vector<8x2xf32>
    %248 = arith.negf %247 : vector<8x2xf32>
    %249 = math.exp %248 : vector<8x2xf32>
    %cst_80 = arith.constant 1.000000e+00 : f32
    %250 = vector.broadcast %cst_80 : f32 to vector<8x2xf32>
    %251 = arith.addf %250, %249 : vector<8x2xf32>
    %252 = arith.divf %250, %251 : vector<8x2xf32>
    %253 = vector.extract_strided_slice %246 {offsets = [0, 2], sizes = [8, 2], strides = [1, 1]} : vector<8x8xf32> to vector<8x2xf32>
    %254 = arith.negf %253 : vector<8x2xf32>
    %255 = math.exp %254 : vector<8x2xf32>
    %cst_81 = arith.constant 1.000000e+00 : f32
    %256 = vector.broadcast %cst_81 : f32 to vector<8x2xf32>
    %257 = arith.addf %256, %255 : vector<8x2xf32>
    %258 = arith.divf %256, %257 : vector<8x2xf32>
    %259 = vector.extract_strided_slice %246 {offsets = [0, 4], sizes = [8, 2], strides = [1, 1]} : vector<8x8xf32> to vector<8x2xf32>
    %260 = math.tanh %259 : vector<8x2xf32>
    %261 = vector.extract_strided_slice %246 {offsets = [0, 6], sizes = [8, 2], strides = [1, 1]} : vector<8x8xf32> to vector<8x2xf32>
    %262 = arith.negf %261 : vector<8x2xf32>
    %263 = math.exp %262 : vector<8x2xf32>
    %cst_82 = arith.constant 1.000000e+00 : f32
    %264 = vector.broadcast %cst_82 : f32 to vector<8x2xf32>
    %265 = arith.addf %264, %263 : vector<8x2xf32>
    %266 = arith.divf %264, %265 : vector<8x2xf32>
    %267 = arith.mulf %258, %232 : vector<8x2xf32>
    %268 = arith.mulf %252, %260 : vector<8x2xf32>
    %269 = arith.addf %267, %268 : vector<8x2xf32>
    %270 = math.tanh %269 : vector<8x2xf32>
    %271 = arith.mulf %266, %270 : vector<8x2xf32>
    %c0_83 = arith.constant 0 : index
    %272 = arith.index_cast %240 : i32 to index
    %c0_84 = arith.constant 0 : index
    %c0_85 = arith.constant 0 : index
    %273 = vector.load %arg5[%c0_83, %272, %c0_84, %c0_85] : memref<1x8x8x2xf32, #tpu.memory_space<vmem>>, vector<1x1x8x2xf32>
    %274 = vector.shape_cast %273 : vector<1x1x8x2xf32> to vector<8x2xf32>
    %275 = vector.shape_cast %271 : vector<8x2xf32> to vector<1x1x8x2xf32>
    tpu.vector_store %arg5[%c0_83, %272, %c0_84, %c0_85], %275 {strides = array<i32>} : memref<1x8x8x2xf32, #tpu.memory_space<vmem>>, vector<1x1x8x2xf32>,
    %c7_i32_86 = arith.constant 7 : i32
    %c7_i32_87 = arith.constant 7 : i32
    %276 = arith.subi %c7_i32_87, %c7_i32_86 : i32
    %277 = arith.select %12, %276, %c7_i32_86 : i32
    %278 = arith.index_cast %277 : i32 to index
    %c0_88 = arith.constant 0 : index
    %c0_89 = arith.constant 0 : index
    %279 = vector.load %arg6[%278, %c0_88, %c0_89] : memref<8x8x8xf32, #tpu.memory_space<vmem>>, vector<1x8x8xf32>
    %280 = vector.shape_cast %279 : vector<1x8x8xf32> to vector<8x8xf32>
    %281 = arith.truncf %271 : vector<8x2xf32> to vector<8x2xbf16>
    %cst_90 = arith.constant dense<0.000000e+00> : vector<8x8xf32>
    %282 = tpu.matmul %281, %14, %cst_90 {dimension_numbers = #tpu.dot_dimension_numbers<[1], [0], [0], [1], [0, 0, 1, 1], [], []>} : vector<8x2xbf16>, vector<2x8xbf16>, vector<8x8xf32> -> vector<8x8xf32>
    %283 = arith.addf %280, %282 : vector<8x8xf32>
    %284 = vector.extract_strided_slice %283 {offsets = [0, 0], sizes = [8, 2], strides = [1, 1]} : vector<8x8xf32> to vector<8x2xf32>
    %285 = arith.negf %284 : vector<8x2xf32>
    %286 = math.exp %285 : vector<8x2xf32>
    %cst_91 = arith.constant 1.000000e+00 : f32
    %287 = vector.broadcast %cst_91 : f32 to vector<8x2xf32>
    %288 = arith.addf %287, %286 : vector<8x2xf32>
    %289 = arith.divf %287, %288 : vector<8x2xf32>
    %290 = vector.extract_strided_slice %283 {offsets = [0, 2], sizes = [8, 2], strides = [1, 1]} : vector<8x8xf32> to vector<8x2xf32>
    %291 = arith.negf %290 : vector<8x2xf32>
    %292 = math.exp %291 : vector<8x2xf32>
    %cst_92 = arith.constant 1.000000e+00 : f32
    %293 = vector.broadcast %cst_92 : f32 to vector<8x2xf32>
    %294 = arith.addf %293, %292 : vector<8x2xf32>
    %295 = arith.divf %293, %294 : vector<8x2xf32>
    %296 = vector.extract_strided_slice %283 {offsets = [0, 4], sizes = [8, 2], strides = [1, 1]} : vector<8x8xf32> to vector<8x2xf32>
    %297 = math.tanh %296 : vector<8x2xf32>
    %298 = vector.extract_strided_slice %283 {offsets = [0, 6], sizes = [8, 2], strides = [1, 1]} : vector<8x8xf32> to vector<8x2xf32>
    %299 = arith.negf %298 : vector<8x2xf32>
    %300 = math.exp %299 : vector<8x2xf32>
    %cst_93 = arith.constant 1.000000e+00 : f32
    %301 = vector.broadcast %cst_93 : f32 to vector<8x2xf32>
    %302 = arith.addf %301, %300 : vector<8x2xf32>
    %303 = arith.divf %301, %302 : vector<8x2xf32>
    %304 = arith.mulf %295, %269 : vector<8x2xf32>
    %305 = arith.mulf %289, %297 : vector<8x2xf32>
    %306 = arith.addf %304, %305 : vector<8x2xf32>
    %307 = math.tanh %306 : vector<8x2xf32>
    %308 = arith.mulf %303, %307 : vector<8x2xf32>
    %c0_94 = arith.constant 0 : index
    %309 = arith.index_cast %277 : i32 to index
    %c0_95 = arith.constant 0 : index
    %c0_96 = arith.constant 0 : index
    %310 = vector.load %arg5[%c0_94, %309, %c0_95, %c0_96] : memref<1x8x8x2xf32, #tpu.memory_space<vmem>>, vector<1x1x8x2xf32>
    %311 = vector.shape_cast %310 : vector<1x1x8x2xf32> to vector<8x2xf32>
    %312 = vector.shape_cast %308 : vector<8x2xf32> to vector<1x1x8x2xf32>
    tpu.vector_store %arg5[%c0_94, %309, %c0_95, %c0_96], %312 {strides = array<i32>} : memref<1x8x8x2xf32, #tpu.memory_space<vmem>>, vector<1x1x8x2xf32>,
    %c8_i32 = arith.constant 8 : i32
    return
  }
  func.func @transform_0(%arg0: i32) -> (i32, i32, i32) {
    %c0_i32 = arith.constant 0 : i32
    %c0_i32_0 = arith.constant 0 : i32
    %c0_i32_1 = arith.constant 0 : i32
    %c0_i32_2 = arith.constant 0 : i32
    return %c0_i32, %c0_i32_0, %c0_i32_1 : i32, i32, i32
  }
  func.func @transform_1(%arg0: i32) -> (i32, i32, i32) {
    %c0_i32 = arith.constant 0 : i32
    %c0_i32_0 = arith.constant 0 : i32
    %c0_i32_1 = arith.constant 0 : i32
    return %arg0, %c0_i32, %c0_i32_0 : i32, i32, i32
  }
  func.func @transform_2(%arg0: i32) -> (i32, i32, i32) {
    %c0_i32 = arith.constant 0 : i32
    %c0_i32_0 = arith.constant 0 : i32
    %c0_i32_1 = arith.constant 0 : i32
    return %arg0, %c0_i32, %c0_i32_0 : i32, i32, i32
  }
  func.func @transform_3(%arg0: i32) -> (i32, i32, i32) {
    %c0_i32 = arith.constant 0 : i32
    %c0_i32_0 = arith.constant 0 : i32
    %c0_i32_1 = arith.constant 0 : i32
    return %arg0, %c0_i32, %c0_i32_0 : i32, i32, i32
  }
  func.func @transform_4(%arg0: i32) -> (i32, i32, i32, i32) {
    %c0_i32 = arith.constant 0 : i32
    %c0_i32_0 = arith.constant 0 : i32
    %c0_i32_1 = arith.constant 0 : i32
    %c0_i32_2 = arith.constant 0 : i32
    return %arg0, %c0_i32, %c0_i32_0, %c0_i32_1 : i32, i32, i32, i32
  }
}

</mosaic_0001>

<bundles_post_ra>
// kernel: lstm_forward.33
= control target key start
LH: loop header
LB: loop body
LE: loop exit
PB: predicated region body
PF: predicated region fallthrough
CT: control target
= control target key end

     0   :  { %s1103_s15 = smov 0   ;;  %s1359_s0 = inlined_call_operand.vmem [shape: f32[8,8,4], index: 0, kind: input, shape index: {}]   ;;  %s1360_s1 = inlined_call_operand.vmem [shape: bf16[2,4,8], index: 1, kind: input, shape index: {}]   ;;  %s1361_s2 = inlined_call_operand.vmem [shape: bf16[2,2,8], index: 2, kind: input, shape index: {}]   ;;  %s1362_s3 = inlined_call_operand.vmem [shape: f32[2,1,8], index: 3, kind: input, shape index: {}]   ;;  %s1363_s4 = inlined_call_operand.vmem [shape: f32[2,8,8,2], index: 4, kind: output, shape index: {}]  }
   0x1 LB: > { %s1109_s16 = sadd.s32 4294967295, %s1071_s15   ;;  %p952_p0 = scmp.ge.s32.totalorder %s1071_s15, 1  ;;  %s1071_s15 = sphi %s1103_s15, %s14_s15  }
   0x2   : > { %p177_p1 = scmp.lt.s32.totalorder %s1071_s15, 3 }
   0x4   : > { %p178_p2 = pnand %p952_p0, %p177_p1 }
   0x5   : > { %p208_p3 = scmp.lt.s32.totalorder (!%p178_p2), %s1109_s16, 1  ;;  %p296_p4 = scmp.eq.s32.totalorder (!%p178_p2), %s1109_s16, 1 }
   0x6   : > { %181 = sbr.rel (%p178_p2) target bundleno = 4689 (0x1251), region = 36  ;;  %s1074_s13 = smov (!%p178_p2), 124  }
   0x7   : > { %s1075_s14 = smov (!%p178_p2), 2   ;;  %s1076_s18 = smov (!%p178_p2), 4  }
   0x8   : > { %s1077_s19 = smov (!%p178_p2), 122  }
   0xb   : > { %s1115_s17 = scalar_select %p208_p3, %s1109_s16, 1  ;;  %v224_v0 = vld [vmem:[%s1359_s0] sm:$0xff]  ;;  %vm254_vm0 = vcmask 1041408   ;;  %v225_v1 = vld [vmem:[%s1359_s0 + $0x8] sm:$0xff]  ;;  %v230_v2 = vld [vmem:[%s1359_s0 + $0x30] sm:$0xff]  ;;  %vm306_vm1 = vcmask 1040384  }
   0xc   : > { %v231_v3 = vld [vmem:[%s1359_s0 + $0x38] sm:$0xff]  ;;  %v232_v6 = vpack.c.bf16 %v225_v1, %v224_v0  ;;  %vm241_vm2 = vcmask 31744   ;;  %v1073_v10 = vmov 0   ;;  %vm287_vm3 = vcmask 64512   ;;  %s1163_s10 = scalar_select %p296_p4, 7, 0 }
   0xd   : > { %s953_s20 = sshll.u32 %s1115_s17, 1  ;;  %s217_s23 = scalar_lea.vmem %s1362_s3, %s1115_s17  ;;  %v235_v7 = vpack.c.bf16 %v231_v3, %v230_v2  ;;  %vm302_vm8 = vcmask 15360  }
   0xe   : > { %s211_s6 = scalar_lea.vmem %s1360_s1, %s953_s20  ;;  %s214_s9 = scalar_lea.vmem %s1361_s2, %s1115_s17  ;;  %v1152_v11 = vld [vmem:[%s217_s23] ss:$0 sm:$0xff] }
   0xf   : > { %v236_v4 = vld [vmem:[%s211_s6] sm:$0x3]  ;;  %s960_s11 = sshll.u32 %s1163_s10, 3  ;;  %s985_s16 = sshll.u32 %s1115_s17, 6 }
  0x10   : > { %v256_v5 = vsel %vm254_vm0, %v236_v4, 0  ;;  %v297_v8 = vld [vmem:[%s214_s9] sm:$0x1]  ;;  %s300_s12 = scalar_lea.vmem [#allocation2], %s960_s11 }
  0x11   : > { %265 = vmatpush.bf16.msra.mxu0 %v256_v5  ;;  %986 = vmatpush.bf16.msra.mxu3 %v256_v5  ;;  %v1141_v9 = vsel %vm306_vm1, %v297_v8, 0  ;;  %s1182_s20 = scalar_select %p296_p4, 6, 1  ;;  %v226_v8 = vld [vmem:[%s1359_s0 + $0x10] sm:$0xff] }
  0x12   : > { %317 = vmatpush.bf16.msra.mxu1 %v1141_v9  ;;  %385 = vmatpush.bf16.msra.mxu2 %v1141_v9  ;;  %s1220_s5 = scalar_select %p296_p4, 5, 2 }
  0x13   : > { %s962_s21 = sshll.u32 %s1182_s20, 3 }
  0x14   : > { %956 = vmatmul.msk.bf16.vlgmr.msra.gmra.mxu0 %vm241_vm2, %v232_v6  ;;  %959 = vmatmul.msk.bf16.vlgmr.msra.gmra.mxu3 %vm241_vm2, %v235_v7  ;;  %s369_s22 = scalar_lea.vmem [#allocation2], %s962_s21  ;;  %s965_s6 = sshll.u32 %s1220_s5, 3 }
  0x15   : > { %453 = vmatpush.bf16.msrb.mxu3 %v1141_v9  ;;  %318 = vmatmul.bf16.vlgmr.msra.gmra.mxu1 %v1073_v10  ;;  %s437_s7 = scalar_lea.vmem [#allocation2], %s965_s6 }
  0x16   : > { %521 = vmatpush.bf16.msrb.mxu1 %v1141_v9  ;;  %589 = vmatpush.bf16.msrb.mxu2 %v1141_v9  ;;  %s1236_s8 = scalar_select %p296_p4, 4, 3 }
  0x17   : > { %s1268_s25 = scalar_select %p296_p4, 2, 5 }
  0x18   : > { %s968_s9 = sshll.u32 %s1236_s8, 3 }
  0x19   : > { %657 = vmatpush.bf16.msra.mxu3 %v1141_v9  ;;  %s974_s26 = sshll.u32 %s1268_s25, 3 }
  0x1a   : > { %725 = vmatpush.bf16.msra.mxu1 %v1141_v9  ;;  %s641_s27 = scalar_lea.vmem [#allocation2], %s974_s26 }
  0x1b   : > { %s1284_s28 = scalar_select %p296_p4, 1, 6 }
  0x1d   : > { %s977_s29 = sshll.u32 %s1284_s28, 3 }
  0x1e   : > { %s709_s30 = scalar_lea.vmem [#allocation2], %s977_s29 }
  0x91   : > { %v267_v12 = vpop.f32.mrf.mxu0 }
  0x92   : > { %v268_v13 = vadd.f32 %v1152_v11, %v267_v12  ;;  %v319_v14 = vpop.f32.mrf.mxu1  ;;  %v228_v12 = vld [vmem:[%s1359_s0 + $0x20] sm:$0xff] }
  0x94   : > { %288 = vst.msk [vmem:[#allocation2] sm:$0xff] %vm287_vm3, %v268_v13  ;;  %v229_v13 = vld [vmem:[%s1359_s0 + $0x28] sm:$0xff] }
  0x97   : > { %v282_v15 = vpop.f32.mrf.mxu3 }
  0x98   : > { %v283_v16 = vadd.f32 %v1152_v11, %v282_v15 }
  0x99   : > { %v269_v17 = vpop.f32.mrf.mxu0 }
  0x9a   : > { %294 = vst.msk [vmem:[#allocation2 + $0x30] sm:$0xff] %vm287_vm3, %v283_v16  ;;  %v270_v18 = vadd.f32 %v1152_v11, %v269_v17  ;;  %v321_v19 = vpop.f32.mrf.mxu1 }
  0x9c   : > { %289 = vst.msk [vmem:[#allocation2 + $0x8] sm:$0xff] %vm287_vm3, %v270_v18 }
  0x9f   : > { %v284_v20 = vpop.f32.mrf.mxu3 }
  0xa0   : > { %v285_v21 = vadd.f32 %v1152_v11, %v284_v20 }
  0xa2   : > { %295 = vst.msk [vmem:[#allocation2 + $0x38] sm:$0xff] %vm287_vm3, %v285_v21 }
  0xa9   : > { %v301_v22 = vld [vmem:[%s300_s12] sm:$0xff]  ;;  %s505_s12 = scalar_lea.vmem [#allocation2], %s968_s9 }
  0xaa   : > { %v323_v23 = vadd.f32 %v319_v14, %v301_v22  ;;  %v370_v48 = vld [vmem:[%s369_s22] sm:$0xff]  ;;  %v234_v14 = vpack.c.bf16 %v229_v13, %v228_v12  ;;  %s1252_s22 = scalar_select %p296_p4, 3, 4 }
  0xac   : > { %1001 = vtanh.f32 %v323_v23  ;;  %v961_v25 = vmul.f32 -1.442695, %v323_v23  ;;  %s971_s23 = sshll.u32 %s1252_s22, 3 }
  0xad   : > { %s573_s24 = scalar_lea.vmem [#allocation2], %s971_s23 }
  0xae   : > { %1003 = vpow2.f32 %v961_v25 }
  0xb2   : > { %v1002_v24 = vpop.eup %1001 }
  0xb3   : > { %346 = vrot.lane.b32.xlu0 %v1002_v24, %s1074_s13 }
  0xb4   : > { %v1004_v26 = vpop.eup %1003 }
  0xb5   : > { %v327_v27 = vadd.f32 1.0, %v1004_v26 }
  0xb7   : > { %1005 = vrcp.f32 %v327_v27  ;;  %v339_v33 = vand.u32 2147483648, %v327_v27  ;;  %vm333_vm5 = vweird.f32 %v327_v27  ;;  %v337_v34 = vand.u32 2147483647, %v327_v27 }
  0xb9   : > { %v340_v36 = vor.u32 1.1754944e-38, %v339_v33  ;;  %vm338_vm7 = vcmp.eq.f32.partialorder %v337_v34, 8.507059e+37 }
  0xbd   : > { %v1006_v28 = vpop.eup %1005 }
  0xbe   : > { %v329_v29 = vmul.f32 %v1006_v28, %v327_v27  ;;  %vm334_vm4 = vweird.f32 %v1006_v28 }
  0xbf   : > { %vm335_vm6 = vmor %vm333_vm5, %vm334_vm4 }
  0xc0   : > { %v330_v30 = vsub.f32 1.0, %v329_v29 }
  0xc2   : > { %v331_v31 = vmul.f32 %v1006_v28, %v330_v30 }
  0xc4   : > { %v332_v32 = vadd.f32 %v1006_v28, %v331_v31 }
  0xc6   : > { %v336_v35 = vsel %vm335_vm6, %v1006_v28, %v332_v32 }
  0xc7   : > { %v341_v38 = vsel %vm338_vm7, %v340_v36, %v336_v35 }
  0xc8   : > { %v344_v40 = vmul.f32 0.0, %v341_v38 }
 0x125   : > { %v347_v37 = vpop.permute.xlu0 %346 }
 0x126   : > { %v349_v39 = vmul.f32 %v347_v37, %v341_v38 }
 0x128   : > { %351 = vrot.lane.b32.xlu0 %v349_v39, %s1075_s14 }
 0x19a   : > { %v352_v41 = vpop.permute.xlu0 %351 }
 0x19b   : > { %v354_v42 = vadd.f32 %v352_v41, %v344_v40 }
 0x19d   : > { %1007 = vtanh.f32 %v354_v42 }
 0x1a3   : > { %v1008_v43 = vpop.eup %1007 }
 0x1a4   : > { %357 = vrot.lane.b32.xlu1 %v1008_v43, %s1076_s18 }
 0x216   : > { %v358_v44 = vpop.permute.xlu1 %357 }
 0x217   : > { %v1173_v45 = vmul.f32 %v358_v44, %v341_v38 }
 0x219   : > { %v371_v46 = vpack.c.bf16 %v1173_v45, %v1173_v45 }
 0x21b   : > { %373 = vrot.lane.b32.xlu1 %v371_v46, %s1077_s19 }
 0x28d   : > { %v374_v47 = vpop.permute.xlu1 %373 }
 0x28e   : > { %963 = vmatmul.msk.bf16.vlgmr.msra.gmra.mxu2 %vm302_vm8, %v374_v47 }
 0x28f   : > { %793 = vmatpush.bf16.msra.mxu2 %v1141_v9  ;;  %v227_v9 = vld [vmem:[%s1359_s0 + $0x18] sm:$0xff] }
 0x290   : > { %v233_v10 = vpack.c.bf16 %v227_v9, %v226_v8 }
 0x292   : > { %957 = vmatmul.msk.bf16.gmra.mxu0 %vm241_vm2, %v233_v10 }
 0x2a2   : > { %958 = vmatmul.msk.bf16.gmra.mxu0 %vm241_vm2, %v234_v14 }
 0x30f   : > { %v272_v18 = vpop.f32.mrf.mxu0 }
 0x310   : > { %v273_v19 = vadd.f32 %v1152_v11, %v272_v18 }
 0x311   : > { %v387_v49 = vpop.f32.mrf.mxu2 }
 0x312   : > { %v391_v50 = vadd.f32 %v387_v49, %v370_v48  ;;  %290 = vst.msk [vmem:[#allocation2 + $0x10] sm:$0xff] %vm287_vm3, %v273_v19 }
 0x314   : > { %1009 = vtanh.f32 %v391_v50  ;;  %v964_v53 = vmul.f32 -1.442695, %v391_v50 }
 0x316   : > { %1011 = vpow2.f32 %v964_v53 }
 0x317   : > { %v274_v20 = vpop.f32.mrf.mxu0 }
 0x318   : > { %v275_v21 = vadd.f32 %v1152_v11, %v274_v20 }
 0x319   : > { %v389_v51 = vpop.f32.mrf.mxu2 }
 0x31a   : > { %v1010_v52 = vpop.eup %1009  ;;  %291 = vst.msk [vmem:[#allocation2 + $0x18] sm:$0xff] %vm287_vm3, %v275_v21 }
 0x31b   : > { %414 = vrot.lane.b32.xlu2 %v1010_v52, %s1074_s13 }
 0x31c   : > { %v1012_v54 = vpop.eup %1011 }
 0x31d   : > { %v395_v55 = vadd.f32 1.0, %v1012_v54 }
 0x31f   : > { %1013 = vrcp.f32 %v395_v55  ;;  %v407_v61 = vand.u32 2147483648, %v395_v55  ;;  %vm401_vm10 = vweird.f32 %v395_v55  ;;  %v405_v62 = vand.u32 2147483647, %v395_v55  ;;  %v277_v22 = vpop.f32.mrf.mxu0 }
 0x320   : > { %v278_v23 = vadd.f32 %v1152_v11, %v277_v22 }
 0x321   : > { %v408_v0 = vor.u32 1.1754944e-38, %v407_v61  ;;  %vm406_vm12 = vcmp.eq.f32.partialorder %v405_v62, 8.507059e+37 }
 0x322   : > { %292 = vst.msk [vmem:[#allocation2 + $0x20] sm:$0xff] %vm287_vm3, %v278_v23 }
 0x325   : > { %v1014_v56 = vpop.eup %1013 }
 0x326   : > { %v397_v57 = vmul.f32 %v1014_v56, %v395_v55  ;;  %vm402_vm9 = vweird.f32 %v1014_v56 }
 0x327   : > { %vm403_vm11 = vmor %vm401_vm10, %vm402_vm9  ;;  %v279_v25 = vpop.f32.mrf.mxu0 }
 0x328   : > { %v398_v58 = vsub.f32 1.0, %v397_v57  ;;  %v280_v26 = vadd.f32 %v1152_v11, %v279_v25 }
 0x32a   : > { %v399_v59 = vmul.f32 %v1014_v56, %v398_v58  ;;  %293 = vst.msk [vmem:[#allocation2 + $0x28] sm:$0xff] %vm287_vm3, %v280_v26 }
 0x32c   : > { %v400_v60 = vadd.f32 %v1014_v56, %v399_v59 }
 0x32e   : > { %v404_v63 = vsel %vm403_vm11, %v1014_v56, %v400_v60 }
 0x32f   : > { %v409_v2 = vsel %vm406_vm12, %v408_v0, %v404_v63 }
 0x330   : > { %v412_v4 = vmul.f32 %v409_v2, %v354_v42 }
 0x331   : > { %v438_v27 = vld [vmem:[%s437_s7] sm:$0xff]  ;;  %s1296_s7 = scalar_select %p296_p4, 0, 7 }
 0x332   : > { %v506_v55 = vld [vmem:[%s505_s12] sm:$0xff] }
 0x333   : > { %v574_v21 = vld [vmem:[%s573_s24] sm:$0xff]  ;;  %s980_s12 = sshll.u32 %s1296_s7, 3 }
 0x334   : > { %s777_s24 = scalar_lea.vmem [#allocation2], %s980_s12 }
 0x375   : > { %v415_v1 = vpop.permute.xlu2 %414 }
 0x376   : > { %v417_v3 = vmul.f32 %v415_v1, %v409_v2 }
 0x378   : > { %419 = vrot.lane.b32.xlu2 %v417_v3, %s1075_s14 }
 0x3d2   : > { %v420_v5 = vpop.permute.xlu2 %419 }
 0x3d3   : > { %v422_v6 = vadd.f32 %v420_v5, %v412_v4 }
 0x3d5   : > { %1015 = vtanh.f32 %v422_v6 }
 0x3db   : > { %v1016_v7 = vpop.eup %1015 }
 0x3dc   : > { %425 = vrot.lane.b32.xlu0 %v1016_v7, %s1076_s18 }
 0x44e   : > { %v426_v15 = vpop.permute.xlu0 %425 }
 0x44f   : > { %v1204_v16 = vmul.f32 %v426_v15, %v409_v2 }
 0x451   : > { %v439_v17 = vpack.c.bf16 %v1204_v16, %v1204_v16 }
 0x453   : > { %441 = vrot.lane.b32.xlu1 %v439_v17, %s1077_s19 }
 0x4c5   : > { %v442_v24 = vpop.permute.xlu1 %441 }
 0x4c6   : > { %966 = vmatmul.msk.bf16.vlgmr.msrb.gmra.mxu3 %vm302_vm8, %v442_v24 }
 0x549   : > { %v455_v28 = vpop.f32.mrf.mxu3 }
 0x54a   : > { %v459_v29 = vadd.f32 %v455_v28, %v438_v27 }
 0x54c   : > { %1017 = vtanh.f32 %v459_v29  ;;  %v967_v32 = vmul.f32 -1.442695, %v459_v29 }
 0x54e   : > { %1019 = vpow2.f32 %v967_v32 }
 0x551   : > { %v457_v30 = vpop.f32.mrf.mxu3 }
 0x552   : > { %v1018_v31 = vpop.eup %1017 }
 0x553   : > { %482 = vrot.lane.b32.xlu2 %v1018_v31, %s1074_s13 }
 0x554   : > { %v1020_v11 = vpop.eup %1019 }
 0x555   : > { %v463_v33 = vadd.f32 1.0, %v1020_v11 }
 0x557   : > { %1021 = vrcp.f32 %v463_v33  ;;  %v475_v39 = vand.u32 2147483648, %v463_v33  ;;  %vm469_vm14 = vweird.f32 %v463_v33  ;;  %v473_v40 = vand.u32 2147483647, %v463_v33 }
 0x559   : > { %v476_v42 = vor.u32 1.1754944e-38, %v475_v39  ;;  %vm474_vm0 = vcmp.eq.f32.partialorder %v473_v40, 8.507059e+37 }
 0x55d   : > { %v1022_v34 = vpop.eup %1021 }
 0x55e   : > { %v465_v35 = vmul.f32 %v1022_v34, %v463_v33  ;;  %vm470_vm13 = vweird.f32 %v1022_v34 }
 0x55f   : > { %vm471_vm15 = vmor %vm469_vm14, %vm470_vm13 }
 0x560   : > { %v466_v36 = vsub.f32 1.0, %v465_v35 }
 0x562   : > { %v467_v37 = vmul.f32 %v1022_v34, %v466_v36 }
 0x564   : > { %v468_v38 = vadd.f32 %v1022_v34, %v467_v37 }
 0x566   : > { %v472_v41 = vsel %vm471_vm15, %v1022_v34, %v468_v38 }
 0x567   : > { %v477_v44 = vsel %vm474_vm0, %v476_v42, %v472_v41 }
 0x568   : > { %v480_v47 = vmul.f32 %v477_v44, %v422_v6 }
 0x5ad   : > { %v483_v43 = vpop.permute.xlu2 %482 }
 0x5ae   : > { %v485_v46 = vmul.f32 %v483_v43, %v477_v44 }
 0x5b0   : > { %487 = vrot.lane.b32.xlu0 %v485_v46, %s1075_s14 }
 0x622   : > { %v488_v48 = vpop.permute.xlu0 %487 }
 0x623   : > { %v490_v49 = vadd.f32 %v488_v48, %v480_v47 }
 0x625   : > { %1023 = vtanh.f32 %v490_v49 }
 0x62b   : > { %v1024_v50 = vpop.eup %1023 }
 0x62c   : > { %493 = vrot.lane.b32.xlu1 %v1024_v50, %s1076_s18 }
 0x69e   : > { %v494_v51 = vpop.permute.xlu1 %493 }
 0x69f   : > { %v1228_v52 = vmul.f32 %v494_v51, %v477_v44 }
 0x6a1   : > { %v507_v53 = vpack.c.bf16 %v1228_v52, %v1228_v52 }
 0x6a3   : > { %509 = vrot.lane.b32.xlu2 %v507_v53, %s1077_s19 }
 0x6fd   : > { %v510_v54 = vpop.permute.xlu2 %509 }
 0x6fe   : > { %969 = vmatmul.msk.bf16.vlgmr.msrb.gmra.mxu1 %vm302_vm8, %v510_v54 }
 0x77b   : > { %v523_v56 = vpop.f32.mrf.mxu1 }
 0x77c   : > { %v527_v57 = vadd.f32 %v523_v56, %v506_v55 }
 0x77e   : > { %1025 = vtanh.f32 %v527_v57  ;;  %v970_v60 = vmul.f32 -1.442695, %v527_v57 }
 0x780   : > { %1027 = vpow2.f32 %v970_v60 }
 0x783   : > { %v525_v58 = vpop.f32.mrf.mxu1 }
 0x784   : > { %v1026_v59 = vpop.eup %1025 }
 0x785   : > { %550 = vrot.lane.b32.xlu0 %v1026_v59, %s1074_s13 }
 0x786   : > { %v1028_v61 = vpop.eup %1027 }
 0x787   : > { %v531_v62 = vadd.f32 1.0, %v1028_v61 }
 0x789   : > { %1029 = vrcp.f32 %v531_v62  ;;  %v543_v4 = vand.u32 2147483648, %v531_v62  ;;  %vm537_vm2 = vweird.f32 %v531_v62  ;;  %v541_v5 = vand.u32 2147483647, %v531_v62 }
 0x78b   : > { %v544_v7 = vor.u32 1.1754944e-38, %v543_v4  ;;  %vm542_vm4 = vcmp.eq.f32.partialorder %v541_v5, 8.507059e+37 }
 0x78f   : > { %v1030_v63 = vpop.eup %1029 }
 0x790   : > { %v533_v0 = vmul.f32 %v1030_v63, %v531_v62  ;;  %vm538_vm1 = vweird.f32 %v1030_v63 }
 0x791   : > { %vm539_vm3 = vmor %vm537_vm2, %vm538_vm1 }
 0x792   : > { %v534_v1 = vsub.f32 1.0, %v533_v0 }
 0x794   : > { %v535_v2 = vmul.f32 %v1030_v63, %v534_v1 }
 0x796   : > { %v536_v3 = vadd.f32 %v1030_v63, %v535_v2 }
 0x798   : > { %v540_v6 = vsel %vm539_vm3, %v1030_v63, %v536_v3 }
 0x799   : > { %v545_v9 = vsel %vm542_vm4, %v544_v7, %v540_v6 }
 0x79a   : > { %v548_v12 = vmul.f32 %v545_v9, %v490_v49  ;;  %v642_v49 = vld [vmem:[%s641_s27] sm:$0xff] }
 0x7f7   : > { %v551_v8 = vpop.permute.xlu0 %550 }
 0x7f8   : > { %v553_v10 = vmul.f32 %v551_v8, %v545_v9 }
 0x7fa   : > { %555 = vrot.lane.b32.xlu1 %v553_v10, %s1075_s14 }
 0x86c   : > { %v556_v13 = vpop.permute.xlu1 %555 }
 0x86d   : > { %v558_v14 = vadd.f32 %v556_v13, %v548_v12 }
 0x86f   : > { %1031 = vtanh.f32 %v558_v14 }
 0x875   : > { %v1032_v15 = vpop.eup %1031 }
 0x876   : > { %561 = vrot.lane.b32.xlu2 %v1032_v15, %s1076_s18  ;;  %v710_v15 = vld [vmem:[%s709_s30] sm:$0xff]  ;;  %s1311_s30 = scalar_lea.vmem %s1363_s4, %s985_s16 }
 0x877   : > { %s433_s17 = scalar_lea.vmem %s1311_s30, %s962_s21  ;;  %s501_s10 = scalar_lea.vmem %s1311_s30, %s965_s6 }
 0x878   : > { %s841_s20 = scalar_lea.vmem %s1311_s30, %s980_s12 }
 0x8d0   : > { %v562_v17 = vpop.permute.xlu2 %561 }
 0x8d1   : > { %v1244_v18 = vmul.f32 %v562_v17, %v545_v9 }
 0x8d3   : > { %v575_v19 = vpack.c.bf16 %v1244_v18, %v1244_v18 }
 0x8d5   : > { %577 = vrot.lane.b32.xlu0 %v575_v19, %s1077_s19 }
 0x947   : > { %v578_v20 = vpop.permute.xlu0 %577 }
 0x948   : > { %972 = vmatmul.msk.bf16.vlgmr.msrb.gmra.mxu2 %vm302_vm8, %v578_v20 }
 0x9cb   : > { %v591_v22 = vpop.f32.mrf.mxu2 }
 0x9cc   : > { %v595_v23 = vadd.f32 %v591_v22, %v574_v21 }
 0x9ce   : > { %1033 = vtanh.f32 %v595_v23  ;;  %v973_v26 = vmul.f32 -1.442695, %v595_v23 }
 0x9d0   : > { %1035 = vpow2.f32 %v973_v26 }
 0x9d3   : > { %v593_v24 = vpop.f32.mrf.mxu2 }
 0x9d4   : > { %v1034_v25 = vpop.eup %1033 }
 0x9d5   : > { %618 = vrot.lane.b32.xlu1 %v1034_v25, %s1074_s13 }
 0x9d6   : > { %v1036_v27 = vpop.eup %1035 }
 0x9d7   : > { %v599_v28 = vadd.f32 1.0, %v1036_v27 }
 0x9d9   : > { %1037 = vrcp.f32 %v599_v28  ;;  %v611_v33 = vand.u32 2147483648, %v599_v28  ;;  %vm605_vm6 = vweird.f32 %v599_v28  ;;  %v609_v34 = vand.u32 2147483647, %v599_v28 }
 0x9db   : > { %v612_v36 = vor.u32 1.1754944e-38, %v611_v33  ;;  %vm610_vm9 = vcmp.eq.f32.partialorder %v609_v34, 8.507059e+37 }
 0x9df   : > { %v1038_v29 = vpop.eup %1037 }
 0x9e0   : > { %v601_v30 = vmul.f32 %v1038_v29, %v599_v28  ;;  %vm606_vm5 = vweird.f32 %v1038_v29 }
 0x9e1   : > { %vm607_vm7 = vmor %vm605_vm6, %vm606_vm5 }
 0x9e2   : > { %v602_v31 = vsub.f32 1.0, %v601_v30 }
 0x9e4   : > { %v603_v32 = vmul.f32 %v1038_v29, %v602_v31 }
 0x9e6   : > { %v604_v11 = vadd.f32 %v1038_v29, %v603_v32 }
 0x9e8   : > { %v608_v35 = vsel %vm607_vm7, %v1038_v29, %v604_v11 }
 0x9e9   : > { %v613_v38 = vsel %vm610_vm9, %v612_v36, %v608_v35 }
 0x9ea   : > { %v616_v40 = vmul.f32 %v613_v38, %v558_v14 }
 0xa47   : > { %v619_v37 = vpop.permute.xlu1 %618 }
 0xa48   : > { %v621_v39 = vmul.f32 %v619_v37, %v613_v38 }
 0xa4a   : > { %623 = vrot.lane.b32.xlu2 %v621_v39, %s1075_s14 }
 0xaa4   : > { %v624_v41 = vpop.permute.xlu2 %623 }
 0xaa5   : > { %v626_v42 = vadd.f32 %v624_v41, %v616_v40 }
 0xaa7   : > { %1039 = vtanh.f32 %v626_v42 }
 0xaad   : > { %v1040_v43 = vpop.eup %1039 }
 0xaae   : > { %629 = vrot.lane.b32.xlu0 %v1040_v43, %s1076_s18 }
 0xb20   : > { %v630_v44 = vpop.permute.xlu0 %629 }
 0xb21   : > { %v1260_v46 = vmul.f32 %v630_v44, %v613_v38  ;;  %v778_v44 = vld [vmem:[%s777_s24] sm:$0xff]  ;;  %s365_s24 = scalar_lea.vmem %s1311_s30, %s960_s11  ;;  %s569_s11 = scalar_lea.vmem %s1311_s30, %s968_s9 }
 0xb23   : > { %v643_v47 = vpack.c.bf16 %v1260_v46, %v1260_v46 }
 0xb25   : > { %645 = vrot.lane.b32.xlu1 %v643_v47, %s1077_s19 }
 0xb97   : > { %v646_v48 = vpop.permute.xlu1 %645 }
 0xb98   : > { %975 = vmatmul.msk.bf16.vlgmr.msra.gmra.mxu3 %vm302_vm8, %v646_v48 }
 0xc1b   : > { %v659_v50 = vpop.f32.mrf.mxu3 }
 0xc1c   : > { %v663_v51 = vadd.f32 %v659_v50, %v642_v49 }
 0xc1e   : > { %1041 = vtanh.f32 %v663_v51  ;;  %v976_v55 = vmul.f32 -1.442695, %v663_v51 }
 0xc20   : > { %1043 = vpow2.f32 %v976_v55 }
 0xc23   : > { %v661_v53 = vpop.f32.mrf.mxu3 }
 0xc24   : > { %v1042_v54 = vpop.eup %1041 }
 0xc25   : > { %686 = vrot.lane.b32.xlu2 %v1042_v54, %s1074_s13 }
 0xc26   : > { %v1044_v56 = vpop.eup %1043 }
 0xc27   : > { %v667_v57 = vadd.f32 1.0, %v1044_v56 }
 0xc29   : > { %1045 = vrcp.f32 %v667_v57  ;;  %v679_v63 = vand.u32 2147483648, %v667_v57  ;;  %vm673_vm11 = vweird.f32 %v667_v57  ;;  %v677_v0 = vand.u32 2147483647, %v667_v57 }
 0xc2b   : > { %v680_v2 = vor.u32 1.1754944e-38, %v679_v63  ;;  %vm678_vm13 = vcmp.eq.f32.partialorder %v677_v0, 8.507059e+37 }
 0xc2f   : > { %v1046_v58 = vpop.eup %1045 }
 0xc30   : > { %v669_v59 = vmul.f32 %v1046_v58, %v667_v57  ;;  %vm674_vm10 = vweird.f32 %v1046_v58 }
 0xc31   : > { %vm675_vm12 = vmor %vm673_vm11, %vm674_vm10 }
 0xc32   : > { %v670_v60 = vsub.f32 1.0, %v669_v59 }
 0xc34   : > { %v671_v61 = vmul.f32 %v1046_v58, %v670_v60 }
 0xc36   : > { %v672_v62 = vadd.f32 %v1046_v58, %v671_v61 }
 0xc38   : > { %v676_v1 = vsel %vm675_vm12, %v1046_v58, %v672_v62 }
 0xc39   : > { %v681_v4 = vsel %vm678_vm13, %v680_v2, %v676_v1 }
 0xc3a   : > { %v684_v6 = vmul.f32 %v681_v4, %v626_v42 }
 0xc7f   : > { %v687_v3 = vpop.permute.xlu2 %686 }
 0xc80   : > { %v689_v5 = vmul.f32 %v687_v3, %v681_v4 }
 0xc82   : > { %691 = vrot.lane.b32.xlu0 %v689_v5, %s1075_s14 }
 0xcf4   : > { %v692_v7 = vpop.permute.xlu0 %691 }
 0xcf5   : > { %v694_v8 = vadd.f32 %v692_v7, %v684_v6 }
 0xcf7   : > { %1047 = vtanh.f32 %v694_v8 }
 0xcfd   : > { %v1048_v9 = vpop.eup %1047 }
 0xcfe   : > { %697 = vrot.lane.b32.xlu1 %v1048_v9, %s1076_s18 }
 0xd70   : > { %v698_v10 = vpop.permute.xlu1 %697 }
 0xd71   : > { %v1276_v12 = vmul.f32 %v698_v10, %v681_v4 }
 0xd73   : > { %v711_v13 = vpack.c.bf16 %v1276_v12, %v1276_v12 }
 0xd75   : > { %713 = vrot.lane.b32.xlu2 %v711_v13, %s1077_s19 }
 0xdcf   : > { %v714_v14 = vpop.permute.xlu2 %713 }
 0xdd0   : > { %978 = vmatmul.msk.bf16.vlgmr.msra.gmra.mxu1 %vm302_vm8, %v714_v14 }
 0xe4d   : > { %v727_v17 = vpop.f32.mrf.mxu1 }
 0xe4e   : > { %v731_v19 = vadd.f32 %v727_v17, %v710_v15 }
 0xe50   : > { %1049 = vtanh.f32 %v731_v19  ;;  %v979_v22 = vmul.f32 -1.442695, %v731_v19 }
 0xe52   : > { %1051 = vpow2.f32 %v979_v22 }
 0xe55   : > { %v729_v20 = vpop.f32.mrf.mxu1 }
 0xe56   : > { %v1050_v21 = vpop.eup %1049 }
 0xe57   : > { %754 = vrot.lane.b32.xlu0 %v1050_v21, %s1074_s13 }
 0xe58   : > { %v1052_v23 = vpop.eup %1051 }
 0xe59   : > { %v735_v24 = vadd.f32 1.0, %v1052_v23 }
 0xe5b   : > { %1053 = vrcp.f32 %v735_v24  ;;  %v747_v30 = vand.u32 2147483648, %v735_v24  ;;  %vm741_vm15 = vweird.f32 %v735_v24  ;;  %v745_v31 = vand.u32 2147483647, %v735_v24 }
 0xe5d   : > { %v748_v11 = vor.u32 1.1754944e-38, %v747_v30  ;;  %vm746_vm1 = vcmp.eq.f32.partialorder %v745_v31, 8.507059e+37 }
 0xe61   : > { %v1054_v25 = vpop.eup %1053 }
 0xe62   : > { %v737_v26 = vmul.f32 %v1054_v25, %v735_v24  ;;  %vm742_vm14 = vweird.f32 %v1054_v25 }
 0xe63   : > { %vm743_vm0 = vmor %vm741_vm15, %vm742_vm14 }
 0xe64   : > { %v738_v27 = vsub.f32 1.0, %v737_v26 }
 0xe66   : > { %v739_v28 = vmul.f32 %v1054_v25, %v738_v27 }
 0xe68   : > { %v740_v29 = vadd.f32 %v1054_v25, %v739_v28 }
 0xe6a   : > { %v744_v32 = vsel %vm743_vm0, %v1054_v25, %v740_v29 }
 0xe6b   : > { %v749_v34 = vsel %vm746_vm1, %v748_v11, %v744_v32 }
 0xe6c   : > { %v752_v36 = vmul.f32 %v749_v34, %v694_v8 }
 0xec9   : > { %v755_v33 = vpop.permute.xlu0 %754 }
 0xeca   : > { %v757_v35 = vmul.f32 %v755_v33, %v749_v34 }
 0xecc   : > { %759 = vrot.lane.b32.xlu1 %v757_v35, %s1075_s14 }
 0xf3e   : > { %v760_v37 = vpop.permute.xlu1 %759 }
 0xf3f   : > { %v762_v38 = vadd.f32 %v760_v37, %v752_v36 }
 0xf41   : > { %1055 = vtanh.f32 %v762_v38 }
 0xf47   : > { %v1056_v39 = vpop.eup %1055 }
 0xf48   : > { %765 = vrot.lane.b32.xlu2 %v1056_v39, %s1076_s18 }
 0xfa2   : > { %v766_v40 = vpop.permute.xlu2 %765 }
 0xfa3   : > { %v768_v41 = vmul.f32 %v766_v40, %v749_v34 }
 0xfa5   : > { %v779_v42 = vpack.c.bf16 %v768_v41, %v768_v41 }
 0xfa7   : > { %781 = vrot.lane.b32.xlu0 %v779_v42, %s1077_s19 }
0x1019   : > { %v782_v43 = vpop.permute.xlu0 %781 }
0x101a   : > { %981 = vmatmul.msk.bf16.vlgmr.msra.gmra.mxu2 %vm302_vm8, %v782_v43 }
0x109d   : > { %v795_v47 = vpop.f32.mrf.mxu2 }
0x109e   : > { %v799_v48 = vadd.f32 %v795_v47, %v778_v44 }
0x10a0   : > { %1057 = vtanh.f32 %v799_v48  ;;  %v982_v51 = vmul.f32 -1.442695, %v799_v48 }
0x10a2   : > { %1059 = vpow2.f32 %v982_v51 }
0x10a5   : > { %v797_v49 = vpop.f32.mrf.mxu2 }
0x10a6   : > { %v1058_v50 = vpop.eup %1057 }
0x10a7   : > { %822 = vrot.lane.b32.xlu1 %v1058_v50, %s1074_s13 }
0x10a8   : > { %v1060_v53 = vpop.eup %1059 }
0x10a9   : > { %v803_v54 = vadd.f32 1.0, %v1060_v53 }
0x10ab   : > { %1061 = vrcp.f32 %v803_v54  ;;  %v815_v60 = vand.u32 2147483648, %v803_v54  ;;  %vm809_vm3 = vweird.f32 %v803_v54 }
0x10ad   : > { %v816_v61 = vor.u32 1.1754944e-38, %v815_v60 }
0x10af   : > { %362 = vrot.lane.b32.xlu1 %v1173_v45, %s1077_s19  ;;  %v813_v45 = vand.u32 2147483647, %v803_v54 }
0x10b1   : > { %v1062_v55 = vpop.eup %1061  ;;  %vm814_vm5 = vcmp.eq.f32.partialorder %v813_v45, 8.507059e+37 }
0x10b2   : > { %v805_v56 = vmul.f32 %v1062_v55, %v803_v54  ;;  %vm810_vm2 = vweird.f32 %v1062_v55 }
0x10b3   : > { %vm811_vm4 = vmor %vm809_vm3, %vm810_vm2 }
0x10b4   : > { %v806_v57 = vsub.f32 1.0, %v805_v56 }
0x10b6   : > { %v807_v58 = vmul.f32 %v1062_v55, %v806_v57 }
0x10b7   : > { %566 = vrot.lane.b32.xlu1 %v1244_v18, %s1077_s19 }
0x10b8   : > { %v808_v59 = vadd.f32 %v1062_v55, %v807_v58 }
0x10ba   : > { %v812_v18 = vsel %vm811_vm4, %v1062_v55, %v808_v59 }
0x10bb   : > { %v817_v63 = vsel %vm814_vm5, %v816_v61, %v812_v18 }
0x10bc   : > { %v820_v2 = vmul.f32 %v817_v63, %v762_v38 }
0x10bf   : > { %770 = vrot.lane.b32.xlu1 %v768_v41, %s1077_s19 }
0x1119   : > { %v823_v62 = vpop.permute.xlu1 %822 }
0x111a   : > { %v825_v0 = vmul.f32 %v823_v62, %v817_v63 }
0x111c   : > { %827 = vrot.lane.b32.xlu2 %v825_v0, %s1075_s14  ;;  %s637_s14 = scalar_lea.vmem %s1311_s30, %s971_s23 }
0x1121   : > { %v363_v1 = vpop.permute.xlu1 %362 }
0x1122   : > { %366 = vst.msk [vmem:[%s365_s24] sm:$0xff] %vm302_vm8, %v363_v1 }
0x1124   : > { %430 = vrot.lane.b32.xlu2 %v1204_v16, %s1077_s19 }
0x1129   : > { %v567_v7 = vpop.permute.xlu1 %566 }
0x112c   : > { %634 = vrot.lane.b32.xlu2 %v1260_v46, %s1077_s19 }
0x1131   : > { %v771_v10 = vpop.permute.xlu1 %770 }
0x1176   : > { %v828_v3 = vpop.permute.xlu2 %827 }
0x1177   : > { %v830_v4 = vadd.f32 %v828_v3, %v820_v2 }
0x1179   : > { %1063 = vtanh.f32 %v830_v4 }
0x117e   : > { %v431_v5 = vpop.permute.xlu2 %430 }
0x117f   : > { %v1064_v6 = vpop.eup %1063  ;;  %434 = vst.msk [vmem:[%s433_s17] sm:$0xff] %vm302_vm8, %v431_v5 }
0x1180   : > { %833 = vrot.lane.b32.xlu0 %v1064_v6, %s1076_s18  ;;  %s705_s18 = scalar_lea.vmem %s1311_s30, %s974_s26 }
0x1188   : > { %498 = vrot.lane.b32.xlu0 %v1228_v52, %s1077_s19  ;;  %v635_v52 = vpop.permute.xlu2 %634 }
0x1190   : > { %702 = vrot.lane.b32.xlu0 %v1276_v12, %s1077_s19 }
0x11f2   : > { %v834_v16 = vpop.permute.xlu0 %833 }
0x11f3   : > { %v836_v46 = vmul.f32 %v834_v16, %v817_v63 }
0x11f5   : > { %838 = vrot.lane.b32.xlu2 %v836_v46, %s1077_s19  ;;  %s773_s19 = scalar_lea.vmem %s1311_s30, %s977_s29 }
0x11fa   : > { %v499_v8 = vpop.permute.xlu0 %498 }
0x11fb   : > { %502 = vst.msk [vmem:[%s501_s10] sm:$0xff] %vm302_vm8, %v499_v8 }
0x11fc   : > { %570 = vst.msk [vmem:[%s569_s11] sm:$0xff] %vm302_vm8, %v567_v7 }
0x11fd   : > { %638 = vst.msk [vmem:[%s637_s14] sm:$0xff] %vm302_vm8, %v635_v52 }
0x1202   : > { %v703_v9 = vpop.permute.xlu0 %702 }
0x1203   : > { %706 = vst.msk [vmem:[%s705_s18] sm:$0xff] %vm302_vm8, %v703_v9 }
0x1204   : > { %774 = vst.msk [vmem:[%s773_s19] sm:$0xff] %vm302_vm8, %v771_v10 }
0x124f   : > { %v839_v12 = vpop.permute.xlu2 %838 }
0x1250   : > { %842 = vst.msk [vmem:[%s841_s20] sm:$0xff] %vm302_vm8, %v839_v12 }
0x1251 PF: > { %s14_s15 = sadd.s32 1, %s1071_s15  }
0x1252   : > { %p11_p5 = scmp.ge.s32.totalorder %s14_s15, 4  }
0x1254   :  { %13 = sbr.rel (!%p11_p5) target bundleno = 1 (0x1), region = 88 }

// kernel: lstm_forward.32
= control target key start
LH: loop header
LB: loop body
LE: loop exit
PB: predicated region body
PF: predicated region fallthrough
CT: control target
= control target key end

     0   :  { %s1130_s15 = smov 0   ;;  %s1391_s0 = inlined_call_operand.vmem [shape: f32[8,8,32], index: 0, kind: input, shape index: {}]   ;;  %s1392_s1 = inlined_call_operand.vmem [shape: bf16[2,32,8], index: 1, kind: input, shape index: {}]   ;;  %s1393_s2 = inlined_call_operand.vmem [shape: bf16[2,2,8], index: 2, kind: input, shape index: {}]   ;;  %s1394_s3 = inlined_call_operand.vmem [shape: f32[2,1,8], index: 3, kind: input, shape index: {}]   ;;  %s1395_s4 = inlined_call_operand.vmem [shape: f32[2,8,8,2], index: 4, kind: output, shape index: {}]  }
   0x1 LB: > { %s1136_s16 = sadd.s32 4294967295, %s1098_s15   ;;  %p966_p0 = scmp.ge.s32.totalorder %s1098_s15, 1  ;;  %s1098_s15 = sphi %s1130_s15, %s14_s15  }
   0x2   : > { %p178_p1 = scmp.lt.s32.totalorder %s1098_s15, 3 }
   0x4   : > { %p179_p2 = pnand %p966_p0, %p178_p1 }
   0x5   : > { %p210_p3 = scmp.lt.s32.totalorder (!%p179_p2), %s1136_s16, 1  ;;  %p310_p4 = scmp.eq.s32.totalorder (!%p179_p2), %s1136_s16, 1 }
   0x6   : > { %182 = sbr.rel (%p179_p2) target bundleno = 4692 (0x1254), region = 36  ;;  %s1102_s19 = smov (!%p179_p2), 2  }
   0x7   : > { %s1103_s20 = smov (!%p179_p2), 4  }
   0xb   : > { %s1142_s17 = scalar_select %p210_p3, %s1136_s16, 1  ;;  %vm320_vm0 = vcmask 1040384   ;;  %v227_v2 = vld [vmem:[%s1391_s0] sm:$0xff]  ;;  %v228_v3 = vld [vmem:[%s1391_s0 + $0x8] sm:$0xff]  ;;  %v233_v6 = vld [vmem:[%s1391_s0 + $0x30] sm:$0xff]  ;;  %vm259_vm1 = vcmask 261120  }
   0xc   : > { %v234_v7 = vld [vmem:[%s1391_s0 + $0x38] sm:$0xff]  ;;  %v235_v8 = vpack.c.bf16 %v228_v3, %v227_v2  ;;  %v1100_v10 = vmov 0   ;;  %vm301_vm2 = vcmask 64512   ;;  %s1195_s12 = scalar_select %p310_p4, 7, 0  ;;  %vm316_vm7 = vcmask 15360  }
   0xd   : > { %s1008_s18 = sshll.u32 %s1142_s17, 4  ;;  %s220_s21 = scalar_lea.vmem %s1394_s3, %s1142_s17  ;;  %v238_v9 = vpack.c.bf16 %v234_v7, %v233_v6 }
   0xe   : > { %s214_s24 = scalar_lea.vmem %s1392_s1, %s1008_s18  ;;  %s217_s27 = scalar_lea.vmem %s1393_s2, %s1142_s17  ;;  %v1184_v12 = vld [vmem:[%s220_s21] ss:$0 sm:$0xff] }
   0xf   : > { %v1011_v0 = vld [vmem:[%s214_s24 + $0x8] sm:$0xff]  ;;  %v311_v1 = vld [vmem:[%s217_s27] sm:$0x1]  ;;  %s983_s13 = sshll.u32 %s1195_s12, 3  ;;  %s1101_s18 = smov 124  }
  0x10   : > { %v1162_v4 = vsel %vm320_vm0, %v311_v1, 0  ;;  %278 = vmatpush.bf16.msra.mxu0 %v1011_v0  ;;  %1012 = vmatpush.bf16.msra.mxu3 %v1011_v0  ;;  %v1010_v5 = vld [vmem:[%s214_s24] sm:$0xff]  ;;  %s314_s14 = scalar_lea.vmem [#allocation2], %s983_s13  ;;  %s1104_s21 = smov 122  }
  0x11   : > { %331 = vmatpush.bf16.msra.mxu1 %v1162_v4  ;;  %399 = vmatpush.bf16.msra.mxu2 %v1162_v4  ;;  %s1214_s22 = scalar_select %p310_p4, 6, 1 }
  0x12   : > { %s1252_s7 = scalar_select %p310_p4, 5, 2 }
  0x13   : > { %s985_s23 = sshll.u32 %s1214_s22, 3  ;;  %s1009_s16 = sshll.u32 %s1142_s17, 6 }
  0x14   : > { %279 = vmatpush.bf16.msra.mxu0 %v1010_v5  ;;  %1013 = vmatpush.bf16.msra.mxu3 %v1010_v5  ;;  %s383_s24 = scalar_lea.vmem [#allocation2], %s985_s23  ;;  %s988_s8 = sshll.u32 %s1252_s7, 3 }
  0x15   : > { %535 = vmatpush.bf16.msrb.mxu1 %v1162_v4  ;;  %603 = vmatpush.bf16.msrb.mxu2 %v1162_v4  ;;  %s451_s9 = scalar_lea.vmem [#allocation2], %s988_s8 }
  0x16   : > { %332 = vmatmul.bf16.vlgmr.msra.gmra.mxu1 %v1100_v10  ;;  %s1268_s10 = scalar_select %p310_p4, 4, 3 }
  0x17   : > { %979 = vmatmul.msk.bf16.vlgmr.msra.gmra.mxu0 %vm259_vm1, %v235_v8  ;;  %982 = vmatmul.msk.bf16.vlgmr.msra.gmra.mxu3 %vm259_vm1, %v238_v9  ;;  %v229_v8 = vld [vmem:[%s1391_s0 + $0x10] sm:$0xff]  ;;  %v230_v9 = vld [vmem:[%s1391_s0 + $0x18] sm:$0xff]  ;;  %s1300_s27 = scalar_select %p310_p4, 2, 5 }
  0x18   : > { %467 = vmatpush.bf16.msrb.mxu3 %v1162_v4  ;;  %v236_v10 = vpack.c.bf16 %v230_v9, %v229_v8  ;;  %s991_s11 = sshll.u32 %s1268_s10, 3 }
  0x19   : > { %739 = vmatpush.bf16.msra.mxu1 %v1162_v4  ;;  %s997_s28 = sshll.u32 %s1300_s27, 3 }
  0x1a   : > { %s655_s29 = scalar_lea.vmem [#allocation2], %s997_s28 }
  0x1b   : > { %s1316_s30 = scalar_select %p310_p4, 1, 6 }
  0x1c   : > { %671 = vmatpush.bf16.msra.mxu3 %v1162_v4 }
  0x1d   : > { %s1000_s5 = sshll.u32 %s1316_s30, 3 }
  0x1e   : > { %s723_s6 = scalar_lea.vmem [#allocation2], %s1000_s5 }
  0x27   : > { %980 = vmatmul.msk.bf16.gmra.mxu0 %vm259_vm1, %v236_v10 }
  0x93   : > { %v333_v11 = vpop.f32.mrf.mxu1 }
  0x94   : > { %v281_v13 = vpop.f32.mrf.mxu0 }
  0x95   : > { %v282_v14 = vadd.f32 %v1184_v12, %v281_v13  ;;  %v232_v13 = vld [vmem:[%s1391_s0 + $0x28] sm:$0xff] }
  0x97   : > { %302 = vst.msk [vmem:[#allocation2] sm:$0xff] %vm301_vm2, %v282_v14 }
  0x9a   : > { %v296_v15 = vpop.f32.mrf.mxu3 }
  0x9b   : > { %v335_v16 = vpop.f32.mrf.mxu1  ;;  %v297_v17 = vadd.f32 %v1184_v12, %v296_v15 }
  0x9c   : > { %v283_v18 = vpop.f32.mrf.mxu0 }
  0x9d   : > { %308 = vst.msk [vmem:[#allocation2 + $0x30] sm:$0xff] %vm301_vm2, %v297_v17  ;;  %v284_v19 = vadd.f32 %v1184_v12, %v283_v18 }
  0x9f   : > { %303 = vst.msk [vmem:[#allocation2 + $0x8] sm:$0xff] %vm301_vm2, %v284_v19 }
  0xa2   : > { %v298_v20 = vpop.f32.mrf.mxu3 }
  0xa3   : > { %v299_v21 = vadd.f32 %v1184_v12, %v298_v20 }
  0xa4   : > { %v286_v18 = vpop.f32.mrf.mxu0 }
  0xa5   : > { %309 = vst.msk [vmem:[#allocation2 + $0x38] sm:$0xff] %vm301_vm2, %v299_v21  ;;  %v287_v19 = vadd.f32 %v1184_v12, %v286_v18 }
  0xac   : > { %v315_v22 = vld [vmem:[%s314_s14] sm:$0xff]  ;;  %v288_v20 = vpop.f32.mrf.mxu0  ;;  %s519_s14 = scalar_lea.vmem [#allocation2], %s991_s11 }
  0xad   : > { %v337_v23 = vadd.f32 %v333_v11, %v315_v22  ;;  %v384_v48 = vld [vmem:[%s383_s24] sm:$0xff]  ;;  %v289_v21 = vadd.f32 %v1184_v12, %v288_v20  ;;  %s1284_s24 = scalar_select %p310_p4, 3, 4 }
  0xae   : > { %v231_v11 = vld [vmem:[%s1391_s0 + $0x20] sm:$0xff]  ;;  %304 = vst.msk [vmem:[#allocation2 + $0x10] sm:$0xff] %vm301_vm2, %v287_v19 }
  0xaf   : > { %1028 = vtanh.f32 %v337_v23  ;;  %v984_v25 = vmul.f32 -1.442695, %v337_v23  ;;  %v237_v14 = vpack.c.bf16 %v232_v13, %v231_v11  ;;  %305 = vst.msk [vmem:[#allocation2 + $0x18] sm:$0xff] %vm301_vm2, %v289_v21  ;;  %s994_s25 = sshll.u32 %s1284_s24, 3 }
  0xb0   : > { %s587_s26 = scalar_lea.vmem [#allocation2], %s994_s25 }
  0xb1   : > { %1030 = vpow2.f32 %v984_v25  ;;  %981 = vmatmul.msk.bf16.gmra.mxu0 %vm259_vm1, %v237_v14 }
  0xb5   : > { %v1029_v24 = vpop.eup %1028 }
  0xb6   : > { %360 = vrot.lane.b32.xlu0 %v1029_v24, %s1101_s18 }
  0xb7   : > { %v1031_v26 = vpop.eup %1030 }
  0xb8   : > { %v341_v27 = vadd.f32 1.0, %v1031_v26 }
  0xba   : > { %1032 = vrcp.f32 %v341_v27  ;;  %v353_v33 = vand.u32 2147483648, %v341_v27  ;;  %vm347_vm4 = vweird.f32 %v341_v27  ;;  %v351_v34 = vand.u32 2147483647, %v341_v27 }
  0xbc   : > { %v354_v36 = vor.u32 1.1754944e-38, %v353_v33  ;;  %vm352_vm6 = vcmp.eq.f32.partialorder %v351_v34, 8.507059e+37 }
  0xc0   : > { %v1033_v28 = vpop.eup %1032 }
  0xc1   : > { %v343_v29 = vmul.f32 %v1033_v28, %v341_v27  ;;  %vm348_vm3 = vweird.f32 %v1033_v28 }
  0xc2   : > { %vm349_vm5 = vmor %vm347_vm4, %vm348_vm3 }
  0xc3   : > { %v344_v30 = vsub.f32 1.0, %v343_v29 }
  0xc5   : > { %v345_v31 = vmul.f32 %v1033_v28, %v344_v30 }
  0xc7   : > { %v346_v32 = vadd.f32 %v1033_v28, %v345_v31 }
  0xc9   : > { %v350_v35 = vsel %vm349_vm5, %v1033_v28, %v346_v32 }
  0xca   : > { %v355_v38 = vsel %vm352_vm6, %v354_v36, %v350_v35 }
  0xcb   : > { %v358_v40 = vmul.f32 0.0, %v355_v38 }
 0x128   : > { %v361_v37 = vpop.permute.xlu0 %360 }
 0x129   : > { %v363_v39 = vmul.f32 %v361_v37, %v355_v38 }
 0x12b   : > { %365 = vrot.lane.b32.xlu0 %v363_v39, %s1102_s19 }
 0x12e   : > { %v291_v22 = vpop.f32.mrf.mxu0 }
 0x12f   : > { %v292_v23 = vadd.f32 %v1184_v12, %v291_v22 }
 0x131   : > { %306 = vst.msk [vmem:[#allocation2 + $0x20] sm:$0xff] %vm301_vm2, %v292_v23 }
 0x136   : > { %v293_v25 = vpop.f32.mrf.mxu0 }
 0x137   : > { %v294_v26 = vadd.f32 %v1184_v12, %v293_v25 }
 0x139   : > { %307 = vst.msk [vmem:[#allocation2 + $0x28] sm:$0xff] %vm301_vm2, %v294_v26 }
 0x140   : > { %v452_v27 = vld [vmem:[%s451_s9] sm:$0xff]  ;;  %s1328_s9 = scalar_select %p310_p4, 0, 7 }
 0x141   : > { %v588_v21 = vld [vmem:[%s587_s26] sm:$0xff] }
 0x19d   : > { %v366_v41 = vpop.permute.xlu0 %365 }
 0x19e   : > { %v368_v42 = vadd.f32 %v366_v41, %v358_v40 }
 0x1a0   : > { %1034 = vtanh.f32 %v368_v42 }
 0x1a6   : > { %v1035_v43 = vpop.eup %1034 }
 0x1a7   : > { %371 = vrot.lane.b32.xlu1 %v1035_v43, %s1103_s20 }
 0x219   : > { %v372_v44 = vpop.permute.xlu1 %371 }
 0x21a   : > { %v1205_v45 = vmul.f32 %v372_v44, %v355_v38 }
 0x21c   : > { %v385_v46 = vpack.c.bf16 %v1205_v45, %v1205_v45 }
 0x21e   : > { %387 = vrot.lane.b32.xlu1 %v385_v46, %s1104_s21 }
 0x290   : > { %v388_v47 = vpop.permute.xlu1 %387 }
 0x291   : > { %986 = vmatmul.msk.bf16.vlgmr.msra.gmra.mxu2 %vm316_vm7, %v388_v47 }
 0x292   : > { %807 = vmatpush.bf16.msra.mxu2 %v1162_v4 }
 0x314   : > { %v401_v49 = vpop.f32.mrf.mxu2 }
 0x315   : > { %v405_v50 = vadd.f32 %v401_v49, %v384_v48 }
 0x317   : > { %1036 = vtanh.f32 %v405_v50  ;;  %v987_v53 = vmul.f32 -1.442695, %v405_v50 }
 0x319   : > { %1038 = vpow2.f32 %v987_v53 }
 0x31c   : > { %v403_v51 = vpop.f32.mrf.mxu2 }
 0x31d   : > { %v1037_v52 = vpop.eup %1036 }
 0x31e   : > { %428 = vrot.lane.b32.xlu2 %v1037_v52, %s1101_s18 }
 0x31f   : > { %v1039_v54 = vpop.eup %1038 }
 0x320   : > { %v409_v55 = vadd.f32 1.0, %v1039_v54 }
 0x322   : > { %1040 = vrcp.f32 %v409_v55  ;;  %v421_v61 = vand.u32 2147483648, %v409_v55  ;;  %vm415_vm9 = vweird.f32 %v409_v55  ;;  %v419_v62 = vand.u32 2147483647, %v409_v55 }
 0x324   : > { %v422_v0 = vor.u32 1.1754944e-38, %v421_v61  ;;  %vm420_vm11 = vcmp.eq.f32.partialorder %v419_v62, 8.507059e+37 }
 0x328   : > { %v1041_v56 = vpop.eup %1040 }
 0x329   : > { %v411_v57 = vmul.f32 %v1041_v56, %v409_v55  ;;  %vm416_vm8 = vweird.f32 %v1041_v56  ;;  %v520_v55 = vld [vmem:[%s519_s14] sm:$0xff]  ;;  %s1003_s14 = sshll.u32 %s1328_s9, 3 }
 0x32a   : > { %vm417_vm10 = vmor %vm415_vm9, %vm416_vm8  ;;  %s791_s26 = scalar_lea.vmem [#allocation2], %s1003_s14 }
 0x32b   : > { %v412_v58 = vsub.f32 1.0, %v411_v57 }
 0x32d   : > { %v413_v59 = vmul.f32 %v1041_v56, %v412_v58 }
 0x32f   : > { %v414_v60 = vadd.f32 %v1041_v56, %v413_v59 }
 0x331   : > { %v418_v63 = vsel %vm417_vm10, %v1041_v56, %v414_v60 }
 0x332   : > { %v423_v2 = vsel %vm420_vm11, %v422_v0, %v418_v63 }
 0x333   : > { %v426_v4 = vmul.f32 %v423_v2, %v368_v42 }
 0x378   : > { %v429_v1 = vpop.permute.xlu2 %428 }
 0x379   : > { %v431_v3 = vmul.f32 %v429_v1, %v423_v2 }
 0x37b   : > { %433 = vrot.lane.b32.xlu2 %v431_v3, %s1102_s19 }
 0x3d5   : > { %v434_v5 = vpop.permute.xlu2 %433 }
 0x3d6   : > { %v436_v6 = vadd.f32 %v434_v5, %v426_v4 }
 0x3d8   : > { %1042 = vtanh.f32 %v436_v6 }
 0x3de   : > { %v1043_v7 = vpop.eup %1042 }
 0x3df   : > { %439 = vrot.lane.b32.xlu0 %v1043_v7, %s1103_s20 }
 0x451   : > { %v440_v15 = vpop.permute.xlu0 %439 }
 0x452   : > { %v1236_v16 = vmul.f32 %v440_v15, %v423_v2 }
 0x454   : > { %v453_v17 = vpack.c.bf16 %v1236_v16, %v1236_v16 }
 0x456   : > { %455 = vrot.lane.b32.xlu1 %v453_v17, %s1104_s21 }
 0x4c8   : > { %v456_v24 = vpop.permute.xlu1 %455 }
 0x4c9   : > { %989 = vmatmul.msk.bf16.vlgmr.msrb.gmra.mxu3 %vm316_vm7, %v456_v24 }
 0x54c   : > { %v469_v28 = vpop.f32.mrf.mxu3 }
 0x54d   : > { %v473_v29 = vadd.f32 %v469_v28, %v452_v27 }
 0x54f   : > { %1044 = vtanh.f32 %v473_v29  ;;  %v990_v32 = vmul.f32 -1.442695, %v473_v29 }
 0x551   : > { %1046 = vpow2.f32 %v990_v32 }
 0x554   : > { %v471_v30 = vpop.f32.mrf.mxu3 }
 0x555   : > { %v1045_v31 = vpop.eup %1044 }
 0x556   : > { %496 = vrot.lane.b32.xlu2 %v1045_v31, %s1101_s18 }
 0x557   : > { %v1047_v12 = vpop.eup %1046 }
 0x558   : > { %v477_v33 = vadd.f32 1.0, %v1047_v12 }
 0x55a   : > { %1048 = vrcp.f32 %v477_v33  ;;  %v489_v39 = vand.u32 2147483648, %v477_v33  ;;  %vm483_vm13 = vweird.f32 %v477_v33  ;;  %v487_v40 = vand.u32 2147483647, %v477_v33 }
 0x55c   : > { %v490_v42 = vor.u32 1.1754944e-38, %v489_v39  ;;  %vm488_vm15 = vcmp.eq.f32.partialorder %v487_v40, 8.507059e+37 }
 0x560   : > { %v1049_v34 = vpop.eup %1048 }
 0x561   : > { %v479_v35 = vmul.f32 %v1049_v34, %v477_v33  ;;  %vm484_vm12 = vweird.f32 %v1049_v34 }
 0x562   : > { %vm485_vm14 = vmor %vm483_vm13, %vm484_vm12 }
 0x563   : > { %v480_v36 = vsub.f32 1.0, %v479_v35 }
 0x565   : > { %v481_v37 = vmul.f32 %v1049_v34, %v480_v36 }
 0x567   : > { %v482_v38 = vadd.f32 %v1049_v34, %v481_v37 }
 0x569   : > { %v486_v41 = vsel %vm485_vm14, %v1049_v34, %v482_v38 }
 0x56a   : > { %v491_v44 = vsel %vm488_vm15, %v490_v42, %v486_v41 }
 0x56b   : > { %v494_v47 = vmul.f32 %v491_v44, %v436_v6 }
 0x5b0   : > { %v497_v43 = vpop.permute.xlu2 %496 }
 0x5b1   : > { %v499_v46 = vmul.f32 %v497_v43, %v491_v44 }
 0x5b3   : > { %501 = vrot.lane.b32.xlu0 %v499_v46, %s1102_s19 }
 0x625   : > { %v502_v48 = vpop.permute.xlu0 %501 }
 0x626   : > { %v504_v49 = vadd.f32 %v502_v48, %v494_v47 }
 0x628   : > { %1050 = vtanh.f32 %v504_v49 }
 0x62e   : > { %v1051_v50 = vpop.eup %1050 }
 0x62f   : > { %507 = vrot.lane.b32.xlu1 %v1051_v50, %s1103_s20 }
 0x6a1   : > { %v508_v51 = vpop.permute.xlu1 %507 }
 0x6a2   : > { %v1260_v52 = vmul.f32 %v508_v51, %v491_v44 }
 0x6a4   : > { %v521_v53 = vpack.c.bf16 %v1260_v52, %v1260_v52 }
 0x6a6   : > { %523 = vrot.lane.b32.xlu2 %v521_v53, %s1104_s21 }
 0x700   : > { %v524_v54 = vpop.permute.xlu2 %523 }
 0x701   : > { %992 = vmatmul.msk.bf16.vlgmr.msrb.gmra.mxu1 %vm316_vm7, %v524_v54 }
 0x77e   : > { %v537_v56 = vpop.f32.mrf.mxu1 }
 0x77f   : > { %v541_v57 = vadd.f32 %v537_v56, %v520_v55 }
 0x781   : > { %1052 = vtanh.f32 %v541_v57  ;;  %v993_v60 = vmul.f32 -1.442695, %v541_v57 }
 0x783   : > { %1054 = vpow2.f32 %v993_v60 }
 0x786   : > { %v539_v58 = vpop.f32.mrf.mxu1 }
 0x787   : > { %v1053_v59 = vpop.eup %1052 }
 0x788   : > { %564 = vrot.lane.b32.xlu0 %v1053_v59, %s1101_s18 }
 0x789   : > { %v1055_v61 = vpop.eup %1054 }
 0x78a   : > { %v545_v62 = vadd.f32 1.0, %v1055_v61 }
 0x78c   : > { %1056 = vrcp.f32 %v545_v62  ;;  %v557_v4 = vand.u32 2147483648, %v545_v62  ;;  %vm551_vm1 = vweird.f32 %v545_v62  ;;  %v555_v5 = vand.u32 2147483647, %v545_v62 }
 0x78e   : > { %v558_v7 = vor.u32 1.1754944e-38, %v557_v4  ;;  %vm556_vm3 = vcmp.eq.f32.partialorder %v555_v5, 8.507059e+37 }
 0x792   : > { %v1057_v63 = vpop.eup %1056 }
 0x793   : > { %v547_v0 = vmul.f32 %v1057_v63, %v545_v62  ;;  %vm552_vm0 = vweird.f32 %v1057_v63 }
 0x794   : > { %vm553_vm2 = vmor %vm551_vm1, %vm552_vm0 }
 0x795   : > { %v548_v1 = vsub.f32 1.0, %v547_v0 }
 0x797   : > { %v549_v2 = vmul.f32 %v1057_v63, %v548_v1 }
 0x799   : > { %v550_v3 = vadd.f32 %v1057_v63, %v549_v2 }
 0x79b   : > { %v554_v6 = vsel %vm553_vm2, %v1057_v63, %v550_v3 }
 0x79c   : > { %v559_v9 = vsel %vm556_vm3, %v558_v7, %v554_v6 }
 0x79d   : > { %v562_v11 = vmul.f32 %v559_v9, %v504_v49  ;;  %v656_v49 = vld [vmem:[%s655_s29] sm:$0xff] }
 0x7fa   : > { %v565_v8 = vpop.permute.xlu0 %564 }
 0x7fb   : > { %v567_v10 = vmul.f32 %v565_v8, %v559_v9 }
 0x7fd   : > { %569 = vrot.lane.b32.xlu1 %v567_v10, %s1102_s19 }
 0x86f   : > { %v570_v13 = vpop.permute.xlu1 %569 }
 0x870   : > { %v572_v14 = vadd.f32 %v570_v13, %v562_v11 }
 0x872   : > { %1058 = vtanh.f32 %v572_v14 }
 0x878   : > { %v1059_v15 = vpop.eup %1058 }
 0x879   : > { %575 = vrot.lane.b32.xlu2 %v1059_v15, %s1103_s20  ;;  %v724_v15 = vld [vmem:[%s723_s6] sm:$0xff]  ;;  %s1343_s6 = scalar_lea.vmem %s1395_s4, %s1009_s16 }
 0x87a   : > { %s447_s17 = scalar_lea.vmem %s1343_s6, %s985_s23  ;;  %s515_s12 = scalar_lea.vmem %s1343_s6, %s988_s8 }
 0x87b   : > { %s855_s22 = scalar_lea.vmem %s1343_s6, %s1003_s14 }
 0x8d3   : > { %v576_v17 = vpop.permute.xlu2 %575 }
 0x8d4   : > { %v1276_v18 = vmul.f32 %v576_v17, %v559_v9 }
 0x8d6   : > { %v589_v19 = vpack.c.bf16 %v1276_v18, %v1276_v18 }
 0x8d8   : > { %591 = vrot.lane.b32.xlu0 %v589_v19, %s1104_s21 }
 0x94a   : > { %v592_v20 = vpop.permute.xlu0 %591 }
 0x94b   : > { %995 = vmatmul.msk.bf16.vlgmr.msrb.gmra.mxu2 %vm316_vm7, %v592_v20 }
 0x9ce   : > { %v605_v22 = vpop.f32.mrf.mxu2 }
 0x9cf   : > { %v609_v23 = vadd.f32 %v605_v22, %v588_v21 }
 0x9d1   : > { %1060 = vtanh.f32 %v609_v23  ;;  %v996_v26 = vmul.f32 -1.442695, %v609_v23 }
 0x9d3   : > { %1062 = vpow2.f32 %v996_v26 }
 0x9d6   : > { %v607_v24 = vpop.f32.mrf.mxu2 }
 0x9d7   : > { %v1061_v25 = vpop.eup %1060 }
 0x9d8   : > { %632 = vrot.lane.b32.xlu1 %v1061_v25, %s1101_s18 }
 0x9d9   : > { %v1063_v27 = vpop.eup %1062 }
 0x9da   : > { %v613_v28 = vadd.f32 1.0, %v1063_v27 }
 0x9dc   : > { %1064 = vrcp.f32 %v613_v28  ;;  %v625_v33 = vand.u32 2147483648, %v613_v28  ;;  %vm619_vm5 = vweird.f32 %v613_v28  ;;  %v623_v34 = vand.u32 2147483647, %v613_v28 }
 0x9de   : > { %v626_v36 = vor.u32 1.1754944e-38, %v625_v33  ;;  %vm624_vm8 = vcmp.eq.f32.partialorder %v623_v34, 8.507059e+37 }
 0x9e2   : > { %v1065_v29 = vpop.eup %1064 }
 0x9e3   : > { %v615_v30 = vmul.f32 %v1065_v29, %v613_v28  ;;  %vm620_vm4 = vweird.f32 %v1065_v29 }
 0x9e4   : > { %vm621_vm6 = vmor %vm619_vm5, %vm620_vm4 }
 0x9e5   : > { %v616_v31 = vsub.f32 1.0, %v615_v30 }
 0x9e7   : > { %v617_v32 = vmul.f32 %v1065_v29, %v616_v31 }
 0x9e9   : > { %v618_v12 = vadd.f32 %v1065_v29, %v617_v32 }
 0x9eb   : > { %v622_v35 = vsel %vm621_vm6, %v1065_v29, %v618_v12 }
 0x9ec   : > { %v627_v38 = vsel %vm624_vm8, %v626_v36, %v622_v35 }
 0x9ed   : > { %v630_v40 = vmul.f32 %v627_v38, %v572_v14 }
 0xa4a   : > { %v633_v37 = vpop.permute.xlu1 %632 }
 0xa4b   : > { %v635_v39 = vmul.f32 %v633_v37, %v627_v38 }
 0xa4d   : > { %637 = vrot.lane.b32.xlu2 %v635_v39, %s1102_s19 }
 0xaa7   : > { %v638_v41 = vpop.permute.xlu2 %637 }
 0xaa8   : > { %v640_v42 = vadd.f32 %v638_v41, %v630_v40 }
 0xaaa   : > { %1066 = vtanh.f32 %v640_v42 }
 0xab0   : > { %v1067_v43 = vpop.eup %1066 }
 0xab1   : > { %643 = vrot.lane.b32.xlu0 %v1067_v43, %s1103_s20 }
 0xb23   : > { %v644_v44 = vpop.permute.xlu0 %643 }
 0xb24   : > { %v1292_v46 = vmul.f32 %v644_v44, %v627_v38  ;;  %v792_v44 = vld [vmem:[%s791_s26] sm:$0xff]  ;;  %s379_s26 = scalar_lea.vmem %s1343_s6, %s983_s13  ;;  %s583_s13 = scalar_lea.vmem %s1343_s6, %s991_s11 }
 0xb26   : > { %v657_v47 = vpack.c.bf16 %v1292_v46, %v1292_v46 }
 0xb28   : > { %659 = vrot.lane.b32.xlu1 %v657_v47, %s1104_s21 }
 0xb9a   : > { %v660_v48 = vpop.permute.xlu1 %659 }
 0xb9b   : > { %998 = vmatmul.msk.bf16.vlgmr.msra.gmra.mxu3 %vm316_vm7, %v660_v48 }
 0xc1e   : > { %v673_v50 = vpop.f32.mrf.mxu3 }
 0xc1f   : > { %v677_v51 = vadd.f32 %v673_v50, %v656_v49 }
 0xc21   : > { %1068 = vtanh.f32 %v677_v51  ;;  %v999_v55 = vmul.f32 -1.442695, %v677_v51 }
 0xc23   : > { %1070 = vpow2.f32 %v999_v55 }
 0xc26   : > { %v675_v53 = vpop.f32.mrf.mxu3 }
 0xc27   : > { %v1069_v54 = vpop.eup %1068 }
 0xc28   : > { %700 = vrot.lane.b32.xlu2 %v1069_v54, %s1101_s18 }
 0xc29   : > { %v1071_v56 = vpop.eup %1070 }
 0xc2a   : > { %v681_v57 = vadd.f32 1.0, %v1071_v56 }
 0xc2c   : > { %1072 = vrcp.f32 %v681_v57  ;;  %v693_v63 = vand.u32 2147483648, %v681_v57  ;;  %vm687_vm10 = vweird.f32 %v681_v57  ;;  %v691_v0 = vand.u32 2147483647, %v681_v57 }
 0xc2e   : > { %v694_v2 = vor.u32 1.1754944e-38, %v693_v63  ;;  %vm692_vm12 = vcmp.eq.f32.partialorder %v691_v0, 8.507059e+37 }
 0xc32   : > { %v1073_v58 = vpop.eup %1072 }
 0xc33   : > { %v683_v59 = vmul.f32 %v1073_v58, %v681_v57  ;;  %vm688_vm9 = vweird.f32 %v1073_v58 }
 0xc34   : > { %vm689_vm11 = vmor %vm687_vm10, %vm688_vm9 }
 0xc35   : > { %v684_v60 = vsub.f32 1.0, %v683_v59 }
 0xc37   : > { %v685_v61 = vmul.f32 %v1073_v58, %v684_v60 }
 0xc39   : > { %v686_v62 = vadd.f32 %v1073_v58, %v685_v61 }
 0xc3b   : > { %v690_v1 = vsel %vm689_vm11, %v1073_v58, %v686_v62 }
 0xc3c   : > { %v695_v4 = vsel %vm692_vm12, %v694_v2, %v690_v1 }
 0xc3d   : > { %v698_v6 = vmul.f32 %v695_v4, %v640_v42 }
 0xc82   : > { %v701_v3 = vpop.permute.xlu2 %700 }
 0xc83   : > { %v703_v5 = vmul.f32 %v701_v3, %v695_v4 }
 0xc85   : > { %705 = vrot.lane.b32.xlu0 %v703_v5, %s1102_s19 }
 0xcf7   : > { %v706_v7 = vpop.permute.xlu0 %705 }
 0xcf8   : > { %v708_v8 = vadd.f32 %v706_v7, %v698_v6 }
 0xcfa   : > { %1074 = vtanh.f32 %v708_v8 }
 0xd00   : > { %v1075_v9 = vpop.eup %1074 }
 0xd01   : > { %711 = vrot.lane.b32.xlu1 %v1075_v9, %s1103_s20 }
 0xd73   : > { %v712_v10 = vpop.permute.xlu1 %711 }
 0xd74   : > { %v1308_v11 = vmul.f32 %v712_v10, %v695_v4 }
 0xd76   : > { %v725_v13 = vpack.c.bf16 %v1308_v11, %v1308_v11 }
 0xd78   : > { %727 = vrot.lane.b32.xlu2 %v725_v13, %s1104_s21 }
 0xdd2   : > { %v728_v14 = vpop.permute.xlu2 %727 }
 0xdd3   : > { %1001 = vmatmul.msk.bf16.vlgmr.msra.gmra.mxu1 %vm316_vm7, %v728_v14 }
 0xe50   : > { %v741_v17 = vpop.f32.mrf.mxu1 }
 0xe51   : > { %v745_v19 = vadd.f32 %v741_v17, %v724_v15 }
 0xe53   : > { %1076 = vtanh.f32 %v745_v19  ;;  %v1002_v22 = vmul.f32 -1.442695, %v745_v19 }
 0xe55   : > { %1078 = vpow2.f32 %v1002_v22 }
 0xe58   : > { %v743_v20 = vpop.f32.mrf.mxu1 }
 0xe59   : > { %v1077_v21 = vpop.eup %1076 }
 0xe5a   : > { %768 = vrot.lane.b32.xlu0 %v1077_v21, %s1101_s18 }
 0xe5b   : > { %v1079_v23 = vpop.eup %1078 }
 0xe5c   : > { %v749_v24 = vadd.f32 1.0, %v1079_v23 }
 0xe5e   : > { %1080 = vrcp.f32 %v749_v24  ;;  %v761_v30 = vand.u32 2147483648, %v749_v24  ;;  %vm755_vm14 = vweird.f32 %v749_v24  ;;  %v759_v31 = vand.u32 2147483647, %v749_v24 }
 0xe60   : > { %v762_v12 = vor.u32 1.1754944e-38, %v761_v30  ;;  %vm760_vm0 = vcmp.eq.f32.partialorder %v759_v31, 8.507059e+37 }
 0xe64   : > { %v1081_v25 = vpop.eup %1080 }
 0xe65   : > { %v751_v26 = vmul.f32 %v1081_v25, %v749_v24  ;;  %vm756_vm13 = vweird.f32 %v1081_v25 }
 0xe66   : > { %vm757_vm15 = vmor %vm755_vm14, %vm756_vm13 }
 0xe67   : > { %v752_v27 = vsub.f32 1.0, %v751_v26 }
 0xe69   : > { %v753_v28 = vmul.f32 %v1081_v25, %v752_v27 }
 0xe6b   : > { %v754_v29 = vadd.f32 %v1081_v25, %v753_v28 }
 0xe6d   : > { %v758_v32 = vsel %vm757_vm15, %v1081_v25, %v754_v29 }
 0xe6e   : > { %v763_v34 = vsel %vm760_vm0, %v762_v12, %v758_v32 }
 0xe6f   : > { %v766_v36 = vmul.f32 %v763_v34, %v708_v8 }
 0xecc   : > { %v769_v33 = vpop.permute.xlu0 %768 }
 0xecd   : > { %v771_v35 = vmul.f32 %v769_v33, %v763_v34 }
 0xecf   : > { %773 = vrot.lane.b32.xlu1 %v771_v35, %s1102_s19 }
 0xf41   : > { %v774_v37 = vpop.permute.xlu1 %773 }
 0xf42   : > { %v776_v38 = vadd.f32 %v774_v37, %v766_v36 }
 0xf44   : > { %1082 = vtanh.f32 %v776_v38 }
 0xf4a   : > { %v1083_v39 = vpop.eup %1082 }
 0xf4b   : > { %779 = vrot.lane.b32.xlu2 %v1083_v39, %s1103_s20 }
 0xfa5   : > { %v780_v40 = vpop.permute.xlu2 %779 }
 0xfa6   : > { %v782_v41 = vmul.f32 %v780_v40, %v763_v34 }
 0xfa8   : > { %v793_v42 = vpack.c.bf16 %v782_v41, %v782_v41 }
 0xfaa   : > { %795 = vrot.lane.b32.xlu0 %v793_v42, %s1104_s21 }
0x101c   : > { %v796_v43 = vpop.permute.xlu0 %795 }
0x101d   : > { %1004 = vmatmul.msk.bf16.vlgmr.msra.gmra.mxu2 %vm316_vm7, %v796_v43 }
0x10a0   : > { %v809_v47 = vpop.f32.mrf.mxu2 }
0x10a1   : > { %v813_v48 = vadd.f32 %v809_v47, %v792_v44 }
0x10a3   : > { %1084 = vtanh.f32 %v813_v48  ;;  %v1005_v51 = vmul.f32 -1.442695, %v813_v48 }
0x10a5   : > { %1086 = vpow2.f32 %v1005_v51 }
0x10a8   : > { %v811_v49 = vpop.f32.mrf.mxu2 }
0x10a9   : > { %v1085_v50 = vpop.eup %1084 }
0x10aa   : > { %836 = vrot.lane.b32.xlu1 %v1085_v50, %s1101_s18 }
0x10ab   : > { %v1087_v53 = vpop.eup %1086 }
0x10ac   : > { %v817_v54 = vadd.f32 1.0, %v1087_v53 }
0x10ae   : > { %1088 = vrcp.f32 %v817_v54  ;;  %v829_v60 = vand.u32 2147483648, %v817_v54  ;;  %vm823_vm2 = vweird.f32 %v817_v54 }
0x10b0   : > { %v830_v61 = vor.u32 1.1754944e-38, %v829_v60 }
0x10b2   : > { %376 = vrot.lane.b32.xlu1 %v1205_v45, %s1104_s21  ;;  %v827_v45 = vand.u32 2147483647, %v817_v54 }
0x10b4   : > { %v1089_v55 = vpop.eup %1088  ;;  %vm828_vm4 = vcmp.eq.f32.partialorder %v827_v45, 8.507059e+37 }
0x10b5   : > { %v819_v56 = vmul.f32 %v1089_v55, %v817_v54  ;;  %vm824_vm1 = vweird.f32 %v1089_v55 }
0x10b6   : > { %vm825_vm3 = vmor %vm823_vm2, %vm824_vm1 }
0x10b7   : > { %v820_v57 = vsub.f32 1.0, %v819_v56 }
0x10b9   : > { %v821_v58 = vmul.f32 %v1089_v55, %v820_v57 }
0x10ba   : > { %580 = vrot.lane.b32.xlu1 %v1276_v18, %s1104_s21 }
0x10bb   : > { %v822_v59 = vadd.f32 %v1089_v55, %v821_v58 }
0x10bd   : > { %v826_v18 = vsel %vm825_vm3, %v1089_v55, %v822_v59 }
0x10be   : > { %v831_v63 = vsel %vm828_vm4, %v830_v61, %v826_v18 }
0x10bf   : > { %v834_v2 = vmul.f32 %v831_v63, %v776_v38 }
0x10c2   : > { %784 = vrot.lane.b32.xlu1 %v782_v41, %s1104_s21 }
0x111c   : > { %v837_v62 = vpop.permute.xlu1 %836 }
0x111d   : > { %v839_v0 = vmul.f32 %v837_v62, %v831_v63 }
0x111f   : > { %841 = vrot.lane.b32.xlu2 %v839_v0, %s1102_s19  ;;  %s651_s19 = scalar_lea.vmem %s1343_s6, %s994_s25 }
0x1124   : > { %v377_v1 = vpop.permute.xlu1 %376 }
0x1125   : > { %380 = vst.msk [vmem:[%s379_s26] sm:$0xff] %vm316_vm7, %v377_v1 }
0x1127   : > { %444 = vrot.lane.b32.xlu2 %v1236_v16, %s1104_s21 }
0x112c   : > { %v581_v7 = vpop.permute.xlu1 %580 }
0x112f   : > { %648 = vrot.lane.b32.xlu2 %v1292_v46, %s1104_s21 }
0x1134   : > { %v785_v10 = vpop.permute.xlu1 %784 }
0x1179   : > { %v842_v3 = vpop.permute.xlu2 %841 }
0x117a   : > { %v844_v4 = vadd.f32 %v842_v3, %v834_v2 }
0x117c   : > { %1090 = vtanh.f32 %v844_v4 }
0x1181   : > { %v445_v5 = vpop.permute.xlu2 %444 }
0x1182   : > { %v1091_v6 = vpop.eup %1090  ;;  %448 = vst.msk [vmem:[%s447_s17] sm:$0xff] %vm316_vm7, %v445_v5 }
0x1183   : > { %847 = vrot.lane.b32.xlu0 %v1091_v6, %s1103_s20  ;;  %s719_s20 = scalar_lea.vmem %s1343_s6, %s997_s28 }
0x118b   : > { %512 = vrot.lane.b32.xlu0 %v1260_v52, %s1104_s21  ;;  %v649_v52 = vpop.permute.xlu2 %648 }
0x1193   : > { %716 = vrot.lane.b32.xlu0 %v1308_v11, %s1104_s21 }
0x11f5   : > { %v848_v16 = vpop.permute.xlu0 %847 }
0x11f6   : > { %v850_v46 = vmul.f32 %v848_v16, %v831_v63 }
0x11f8   : > { %852 = vrot.lane.b32.xlu2 %v850_v46, %s1104_s21  ;;  %s787_s21 = scalar_lea.vmem %s1343_s6, %s1000_s5 }
0x11fd   : > { %v513_v8 = vpop.permute.xlu0 %512 }
0x11fe   : > { %516 = vst.msk [vmem:[%s515_s12] sm:$0xff] %vm316_vm7, %v513_v8 }
0x11ff   : > { %584 = vst.msk [vmem:[%s583_s13] sm:$0xff] %vm316_vm7, %v581_v7 }
0x1200   : > { %652 = vst.msk [vmem:[%s651_s19] sm:$0xff] %vm316_vm7, %v649_v52 }
0x1205   : > { %v717_v9 = vpop.permute.xlu0 %716 }
0x1206   : > { %720 = vst.msk [vmem:[%s719_s20] sm:$0xff] %vm316_vm7, %v717_v9 }
0x1207   : > { %788 = vst.msk [vmem:[%s787_s21] sm:$0xff] %vm316_vm7, %v785_v10 }
0x1252   : > { %v853_v11 = vpop.permute.xlu2 %852 }
0x1253   : > { %856 = vst.msk [vmem:[%s855_s22] sm:$0xff] %vm316_vm7, %v853_v11 }
0x1254 PF: > { %s14_s15 = sadd.s32 1, %s1098_s15  }
0x1255   : > { %p11_p5 = scmp.ge.s32.totalorder %s14_s15, 4  }
0x1257   :  { %13 = sbr.rel (!%p11_p5) target bundleno = 1 (0x1), region = 88 }

</bundles_post_ra>
